<compile_context>
chip_gen: v7x
topology: tpu7x:2x2x1
jax: 0.10.0
libtpu: 0.0.40
codegen_flags: <defaults>
</compile_context>

<pallas_src>
import jax
import jax.numpy as jnp
from jax.experimental import pallas as pl
from jax.experimental.pallas import tpu as pltpu


# ----------------------------------------------------------------------------
# Fused kernel.  Grid axis = K-reduction chunks of the FC layer.
#   step k:    o_acc += pooled_chunk_k @ w1_chunk_k            (MXU, f32 acc)
#   last step: o = relu( relu(o_acc + b1) @ w2 + b2 )          (epilogue)
# The f32 output block is VMEM-resident across the whole grid and is used
# directly as the accumulator.
# ----------------------------------------------------------------------------
def _fc_conv_kernel(x_ref, w1_ref, b1_ref, w2_ref, b2_ref, o_ref):
    k = pl.program_id(0)

    @pl.when(k == 0)
    def _():
        o_ref[...] = jnp.zeros_like(o_ref)

    # FC partial product for this K chunk: bf16 MXU operands, f32 accumulation.
    o_ref[...] += jnp.dot(x_ref[...].astype(jnp.bfloat16), w1_ref[...],
                          preferred_element_type=jnp.float32)

    @pl.when(k == pl.num_programs(0) - 1)
    def _():
        h = jnp.maximum(o_ref[...] + b1_ref[...], 0.0)       # FC bias + ReLU
        y = jnp.dot(h.astype(jnp.bfloat16), w2_ref[...],     # 1x1 conv
                    preferred_element_type=jnp.float32)
        o_ref[...] = jnp.maximum(y + b2_ref[...], 0.0)       # conv bias + ReLU


# ----------------------------------------------------------------------------
# Parameter prep: PyTorch-shaped weights -> kernel layout.
#   nn.Linear(K, 512).weight : (512, K); the K axis is already in torch
#     flatten order (c*P + p), identical to the wrapper's pooled flatten
#     order, so a plain transpose suffices (no row permutation).
#   nn.Conv2d(512, 512, 1).weight : (512, 512, 1, 1) -> (in, out).
# Weights are stored/streamed in bfloat16 (HBM-bandwidth-bound kernel).
# (In a real deployment this runs once at load time, not per forward.)
# ----------------------------------------------------------------------------
def prepare_params(torch_params):
    w1, b1, w2, b2 = torch_params
    w1_bf = w1.T.astype(jnp.bfloat16)                        # (K, 512)
    w2_bf = w2.reshape(512, 512).T.astype(jnp.bfloat16)      # (in, out)
    return (w1_bf,
            b1.reshape(1, 512).astype(jnp.float32),
            w2_bf,
            b2.reshape(1, 512).astype(jnp.float32))


def full_image_encoder(x, torch_params, kernel_size):
    N, C, H, W = x.shape
    ks = kernel_size
    assert H % ks == 0 and W % ks == 0, (
        "AvgPool2d with partial windows not supported (H, W must divide ks)")
    hp, wp = H // ks, W // ks
    K = C * hp * wp

    w1_bf, b1, w2_bf, b2 = prepare_params(torch_params)
    assert w1_bf.shape[0] == K, (w1_bf.shape, K)

    # AvgPool2d(ks) as a plain XLA reduction (no HBM transpose of x); the
    # reshape keeps the torch flatten order c*P + p for the FC input.
    pooled = x.reshape(N, C, hp, ks, wp, ks).mean(axis=(3, 5))   # (N, C, hp, wp)
    pooled_flat = pooled.reshape(N, K).astype(jnp.float32)       # (N, K)

    # TODO(synk): Dropout2d(p=0.5) is identity in eval mode; not implemented.

    # Chunk the FC K reduction: 1 MiB bf16 w1 tiles keep the per-step DMA well
    # above the fixed grid-step overhead while shrinking the exposed prologue.
    if K % 1024 == 0:
        tk = 1024
    elif K % 512 == 0:
        tk = 512
    else:
        tk = K
    nk = K // tk

    out = pl.pallas_call(
        _fc_conv_kernel,
        out_shape=jax.ShapeDtypeStruct((N, 512), jnp.float32),
        grid_spec=pltpu.PrefetchScalarGridSpec(
            num_scalar_prefetch=0,
            grid=(nk,),                                          # K reduction
            in_specs=[
                pl.BlockSpec((N, tk), lambda k: (0, k)),         # pooled chunk
                pl.BlockSpec((tk, 512), lambda k: (k, 0)),       # w1 chunk (bf16)
                pl.BlockSpec((1, 512), lambda k: (0, 0)),        # b1 (resident)
                pl.BlockSpec((512, 512), lambda k: (0, 0)),      # w2 (resident, bf16)
                pl.BlockSpec((1, 512), lambda k: (0, 0)),        # b2 (resident)
            ],
            out_specs=pl.BlockSpec((N, 512), lambda k: (0, 0)),  # resident acc
        ),
        compiler_params=pltpu.CompilerParams(
            dimension_semantics=("arbitrary",),
        ),
    )(pooled_flat, w1_bf, b1, w2_bf, b2)

    return out.reshape(N, 512, 1, 1)


# ----------------------------------------------------------------------------
# Deterministic synthetic parameters in PyTorch shapes (so the check exercises
# the transpose logic in prepare_params).
# ----------------------------------------------------------------------------
def init_params(key, K):
    k1, k2, k3, k4 = jax.random.split(key, 4)
    w1 = jax.random.normal(k1, (512, K), jnp.float32) * 0.01          # Linear.weight
    b1 = jax.random.normal(k2, (512,), jnp.float32) * 0.01            # Linear.bias
    w2 = jax.random.normal(k3, (512, 512, 1, 1), jnp.float32) * 0.02  # Conv2d.weight
    b2 = jax.random.normal(k4, (512,), jnp.float32) * 0.01            # Conv2d.bias
    return w1, b1, w2, b2


def reference(x, torch_params, ks):
    """Pure-JAX reference of the PyTorch forward, using the same bf16-rounded
    weights the kernel streams (weight storage dtype is a deliberate
    optimization; activations stay f32 here)."""
    w1, b1, w2, b2 = torch_params
    N, C, H, W = x.shape
    hp, wp = H // ks, W // ks
    pooled = x.reshape(N, C, hp, ks, wp, ks).mean(axis=(3, 5))
    xf = pooled.reshape(N, -1)                                  # torch c*P+p order
    w1r = w1.astype(jnp.bfloat16).astype(jnp.float32)
    w2r = w2.reshape(512, 512).astype(jnp.bfloat16).astype(jnp.float32)
    h = jnp.maximum(xf @ w1r.T + b1, 0.0)
    y = jnp.maximum(h @ w2r.T + b2, 0.0)
    return y.reshape(N, 512, 1, 1)


if __name__ == "__main__":
    # Small-but-consistent shapes: the module hardcodes 2048 input channels.
    H = W = 8
    KS = 4                       # kernel_size -> pooled spatial 2x2 (P = 4)
    N, C = 2, 2048
    hp, wp = H // KS, W // KS
    K = C * hp * wp              # 8192 = Linear in_features

    key = jax.random.PRNGKey(0)
    kx, kp = jax.random.split(key)
    x = jax.random.normal(kx, (N, C, H, W), jnp.float32)
    torch_params = init_params(kp, K)

    encode = jax.jit(full_image_encoder, static_argnums=2)
    out = jax.block_until_ready(encode(x, torch_params, KS))
    assert out.shape == (N, 512, 1, 1), out.shape

    ref = reference(x, torch_params, KS)
    # bf16 MXU operands (f32 accumulation) vs f32 reference math.
    assert jnp.allclose(out, ref, atol=3e-3, rtol=3e-3), (
        "mismatch vs reference, max abs diff = "
        + str(float(jnp.max(jnp.abs(out - ref)))))
    print("KERNEL_OK")
</pallas_src>

<mosaic_0001>
module attributes {stable_mosaic.version = 11 : i64} {
  func.func @_fc_conv_kernel(%arg0: i32, %arg1: memref<2x1024xf32, #tpu.memory_space<vmem>>, %arg2: memref<1024x512xbf16, #tpu.memory_space<vmem>>, %arg3: memref<1x512xf32, #tpu.memory_space<vmem>>, %arg4: memref<512x512xbf16, #tpu.memory_space<vmem>>, %arg5: memref<1x512xf32, #tpu.memory_space<vmem>>, %arg6: memref<2x512xf32, #tpu.memory_space<vmem>>) attributes {dimension_semantics = [#tpu.dimension_semantics<arbitrary>], iteration_bounds = array<i64: 8>, scalar_prefetch = 0 : i64, scratch_operands = 0 : i64, tpu.core_type = #tpu.core_type<tc>, window_params = [{transform_indices = @transform_0, window_bounds = array<i64: 2, 1024>}, {transform_indices = @transform_1, window_bounds = array<i64: 1024, 512>}, {pipeline_mode = #tpu.pipeline_mode<synchronous>, transform_indices = @transform_2, window_bounds = array<i64: 1, 512>}, {pipeline_mode = #tpu.pipeline_mode<synchronous>, transform_indices = @transform_3, window_bounds = array<i64: 512, 512>}, {pipeline_mode = #tpu.pipeline_mode<synchronous>, transform_indices = @transform_4, window_bounds = array<i64: 1, 512>}, {pipeline_mode = #tpu.pipeline_mode<synchronous>, transform_indices = @transform_5, window_bounds = array<i64: 2, 512>}]} {
    %c0_i32 = arith.constant 0 : i32
    %0 = arith.cmpi eq, %arg0, %c0_i32 : i32
    %1 = arith.extui %0 : i1 to i32
    %c0_i32_0 = arith.constant 0 : i32
    %2 = arith.cmpi ne, %1, %c0_i32_0 : i32
    scf.if %2 {
      %cst_9 = arith.constant 0.000000e+00 : f32
      %13 = vector.broadcast %cst_9 : f32 to vector<2x512xf32>
      %c0_10 = arith.constant 0 : index
      %c0_11 = arith.constant 0 : index
      %14 = vector.load %arg6[%c0_10, %c0_11] : memref<2x512xf32, #tpu.memory_space<vmem>>, vector<2x512xf32>
      tpu.vector_store %arg6[%c0_10, %c0_11], %13 {strides = array<i32>} : memref<2x512xf32, #tpu.memory_space<vmem>>, vector<2x512xf32>,
    } else {
    }
    %c0 = arith.constant 0 : index
    %c0_1 = arith.constant 0 : index
    %3 = vector.load %arg6[%c0, %c0_1] : memref<2x512xf32, #tpu.memory_space<vmem>>, vector<2x512xf32>
    %c0_2 = arith.constant 0 : index
    %c0_3 = arith.constant 0 : index
    %4 = vector.load %arg1[%c0_2, %c0_3] : memref<2x1024xf32, #tpu.memory_space<vmem>>, vector<2x1024xf32>
    %5 = arith.truncf %4 : vector<2x1024xf32> to vector<2x1024xbf16>
    %c0_4 = arith.constant 0 : index
    %c0_5 = arith.constant 0 : index
    %6 = vector.load %arg2[%c0_4, %c0_5] : memref<1024x512xbf16, #tpu.memory_space<vmem>>, vector<1024x512xbf16>
    %cst = arith.constant dense<0.000000e+00> : vector<2x512xf32>
    %7 = tpu.matmul %5, %6, %cst {dimension_numbers = #tpu.dot_dimension_numbers<[1], [0], [0], [1], [0, 0, 1, 1], [], []>} : vector<2x1024xbf16>, vector<1024x512xbf16>, vector<2x512xf32> -> vector<2x512xf32>
    %8 = arith.addf %3, %7 : vector<2x512xf32>
    %c0_6 = arith.constant 0 : index
    %c0_7 = arith.constant 0 : index
    %9 = vector.load %arg6[%c0_6, %c0_7] : memref<2x512xf32, #tpu.memory_space<vmem>>, vector<2x512xf32>
    tpu.vector_store %arg6[%c0_6, %c0_7], %8 {strides = array<i32>} : memref<2x512xf32, #tpu.memory_space<vmem>>, vector<2x512xf32>,
    %c7_i32 = arith.constant 7 : i32
    %10 = arith.cmpi eq, %arg0, %c7_i32 : i32
    %11 = arith.extui %10 : i1 to i32
    %c0_i32_8 = arith.constant 0 : i32
    %12 = arith.cmpi ne, %11, %c0_i32_8 : i32
    scf.if %12 {
      %c0_9 = arith.constant 0 : index
      %c0_10 = arith.constant 0 : index
      %13 = vector.load %arg6[%c0_9, %c0_10] : memref<2x512xf32, #tpu.memory_space<vmem>>, vector<2x512xf32>
      %c0_11 = arith.constant 0 : index
      %c0_12 = arith.constant 0 : index
      %14 = vector.load %arg3[%c0_11, %c0_12] : memref<1x512xf32, #tpu.memory_space<vmem>>, vector<1x512xf32>
      %15 = vector.broadcast %14 : vector<1x512xf32> to vector<2x512xf32>
      %16 = arith.addf %13, %15 : vector<2x512xf32>
      %cst_13 = arith.constant 0.000000e+00 : f32
      %17 = vector.broadcast %cst_13 : f32 to vector<2x512xf32>
      %18 = arith.maximumf %16, %17 : vector<2x512xf32>
      %19 = arith.truncf %18 : vector<2x512xf32> to vector<2x512xbf16>
      %c0_14 = arith.constant 0 : index
      %c0_15 = arith.constant 0 : index
      %20 = vector.load %arg4[%c0_14, %c0_15] : memref<512x512xbf16, #tpu.memory_space<vmem>>, vector<512x512xbf16>
      %cst_16 = arith.constant dense<0.000000e+00> : vector<2x512xf32>
      %21 = tpu.matmul %19, %20, %cst_16 {dimension_numbers = #tpu.dot_dimension_numbers<[1], [0], [0], [1], [0, 0, 1, 1], [], []>} : vector<2x512xbf16>, vector<512x512xbf16>, vector<2x512xf32> -> vector<2x512xf32>
      %c0_17 = arith.constant 0 : index
      %c0_18 = arith.constant 0 : index
      %22 = vector.load %arg5[%c0_17, %c0_18] : memref<1x512xf32, #tpu.memory_space<vmem>>, vector<1x512xf32>
      %23 = vector.broadcast %22 : vector<1x512xf32> to vector<2x512xf32>
      %24 = arith.addf %21, %23 : vector<2x512xf32>
      %cst_19 = arith.constant 0.000000e+00 : f32
      %25 = vector.broadcast %cst_19 : f32 to vector<2x512xf32>
      %26 = arith.maximumf %24, %25 : vector<2x512xf32>
      %c0_20 = arith.constant 0 : index
      %c0_21 = arith.constant 0 : index
      %27 = vector.load %arg6[%c0_20, %c0_21] : memref<2x512xf32, #tpu.memory_space<vmem>>, vector<2x512xf32>
      tpu.vector_store %arg6[%c0_20, %c0_21], %26 {strides = array<i32>} : memref<2x512xf32, #tpu.memory_space<vmem>>, vector<2x512xf32>,
    } else {
    }
    return
  }
  func.func @transform_0(%arg0: i32) -> (i32, i32) {
    %c0_i32 = arith.constant 0 : i32
    %c0_i32_0 = arith.constant 0 : i32
    return %c0_i32, %arg0 : i32, i32
  }
  func.func @transform_1(%arg0: i32) -> (i32, i32) {
    %c0_i32 = arith.constant 0 : i32
    %c0_i32_0 = arith.constant 0 : i32
    return %arg0, %c0_i32 : i32, i32
  }
  func.func @transform_2(%arg0: i32) -> (i32, i32) {
    %c0_i32 = arith.constant 0 : i32
    %c0_i32_0 = arith.constant 0 : i32
    %c0_i32_1 = arith.constant 0 : i32
    return %c0_i32, %c0_i32_0 : i32, i32
  }
  func.func @transform_3(%arg0: i32) -> (i32, i32) {
    %c0_i32 = arith.constant 0 : i32
    %c0_i32_0 = arith.constant 0 : i32
    %c0_i32_1 = arith.constant 0 : i32
    return %c0_i32, %c0_i32_0 : i32, i32
  }
  func.func @transform_4(%arg0: i32) -> (i32, i32) {
    %c0_i32 = arith.constant 0 : i32
    %c0_i32_0 = arith.constant 0 : i32
    %c0_i32_1 = arith.constant 0 : i32
    return %c0_i32, %c0_i32_0 : i32, i32
  }
  func.func @transform_5(%arg0: i32) -> (i32, i32) {
    %c0_i32 = arith.constant 0 : i32
    %c0_i32_0 = arith.constant 0 : i32
    %c0_i32_1 = arith.constant 0 : i32
    return %c0_i32, %c0_i32_0 : i32, i32
  }
}

</mosaic_0001>

<bundles_post_ra>
// kernel: full_image_encoder.1
= control target key start
LH: loop header
LB: loop body
LE: loop exit
PB: predicated region body
PF: predicated region fallthrough
CT: control target
= control target key end

     0   :  { %s4337_s18 = smov 0   ;;  %s5093_s0 = inlined_call_operand.vmem [shape: f32[2,8192], index: 0, kind: input, shape index: {}]   ;;  %s5094_s1 = inlined_call_operand.vmem [shape: bf16[8192,512], index: 1, kind: input, shape index: {}]   ;;  %s5095_s2 = inlined_call_operand.vmem [shape: f32[1,512], index: 2, kind: input, shape index: {}]   ;;  %s5096_s3 = inlined_call_operand.vmem [shape: bf16[512,512], index: 3, kind: input, shape index: {}]   ;;  %s5097_s4 = inlined_call_operand.vmem [shape: f32[1,512], index: 4, kind: input, shape index: {}]   ;;  %s5098_s5 = inlined_call_operand.vmem [shape: f32[2,512], index: 5, kind: output, shape index: {}]  }
   0x1 LB: > { %s4343_s19 = sadd.s32 4294967295, %s4303_s18   ;;  %p3278_p0 = scmp.ge.s32.totalorder %s4303_s18, 1  ;;  %s4303_s18 = sphi %s4337_s18, %s15_s18  }
   0x2   : > { %p195_p1 = scmp.lt.s32.totalorder %s4303_s18, 9 }
   0x4   : > { %p196_p2 = pnand %p3278_p0, %p195_p1 }
   0x5   : > { %s3279_s20 = sshll.u32 (!%p196_p2), %s4343_s19, 3  ;;  %s3281_s21 = sshll.u32 (!%p196_p2), %s4343_s19, 7 }
   0x6   : > { %199 = sbr.rel (%p196_p2) target bundleno = 808 (0x328), region = 40  ;;  %p225_p3 = scmp.lt.s32.totalorder (!%p196_p2), %s3279_s20, 63 }
   0x7   : > { %p231_p4 = scmp.lt.s32.totalorder (!%p196_p2), %s3281_s21, 1023  ;;  %p3284_p5 = scmp.ne.s32.totalorder (!%p196_p2), %s4343_s19, 0 }
   0xd   : > { %s5100_s20 = smov (!%p225_p3, %s3279_s20), 63  ;;  %s5102_s21 = smov (!%p231_p4, %s3281_s21), 1023 }
   0xe   : > { %s3280_s22 = sshll.u32 %s5100_s20, 1  ;;  %s3672_s26 = sshll.u32 %s5102_s21, 4  ;;  %v4305_v0 = vmov (!%p3284_p5), 0.0  }
   0xf   : > { %s4352_s25 = scalar_lea.vmem %s5093_s0, %s3280_s22  ;;  %s4357_s29 = scalar_lea.vmem %s5094_s1, %s3672_s26  ;;  %241 = vst [vmem:[%s5098_s5] sm:$0xff] (!%p3284_p5), %v4305_v0 }
  0x10   : > { %240 = sbr.rel (%p3284_p5) target bundleno = 23 (0x17), region = 44 }
  0x17 PF: > { %v3719_v1 = vld [vmem:[%s4357_s29 + $0x4] ss:$16 sps:$4 sm:$0xff]   ;;  %v3721_v2 = vld [vmem:[%s4357_s29 + $0xc] ss:$16 sps:$4 sm:$0xff]   ;;  %v3723_v3 = vld [vmem:[%s4357_s29] ss:$16 sps:$4 sm:$0xff]   ;;  %v251_v39 = vlaneseq }
  0x18   : > { %1833 = vmatprep.subr.bf16.mxu0 %v3719_v1  ;;  %v3724_v4 = vld [vmem:[%s4357_s29 + $0x8] ss:$16 sps:$4 sm:$0xff]   ;;  %1997 = vmatprep.subr.bf16.mxu1 %v3721_v2  ;;  %v3725_v5 = vld [vmem:[%s4357_s29 + $0x24] ss:$16 sps:$4 sm:$0xff]   ;;  %v3727_v6 = vld [vmem:[%s4357_s29 + $0x2c] ss:$16 sps:$4 sm:$0xff]  }
  0x19   : > { %1834 = vmatpush1.bf16.msra.mxu0 %v3723_v3  ;;  %1998 = vmatpush1.bf16.msra.mxu1 %v3724_v4  ;;  %v3729_v7 = vld [vmem:[%s4357_s29 + $0x20] ss:$16 sps:$4 sm:$0xff]   ;;  %v3730_v8 = vld [vmem:[%s4357_s29 + $0x28] ss:$16 sps:$4 sm:$0xff]   ;;  %v3731_v9 = vld [vmem:[%s4357_s29 + $0x44] ss:$16 sps:$4 sm:$0xff]  }
  0x1a   : > { %1835 = vmatprep.subr.bf16.mxu0 %v3725_v5  ;;  %1999 = vmatprep.subr.bf16.mxu1 %v3727_v6  ;;  %v3733_v10 = vld [vmem:[%s4357_s29 + $0x4c] ss:$16 sps:$4 sm:$0xff]   ;;  %v3735_v11 = vld [vmem:[%s4357_s29 + $0x40] ss:$16 sps:$4 sm:$0xff]   ;;  %v3736_v12 = vld [vmem:[%s4357_s29 + $0x48] ss:$16 sps:$4 sm:$0xff]  }
  0x1b   : > { %v3737_v13 = vld [vmem:[%s4357_s29 + $0x64] ss:$16 sps:$4 sm:$0xff]   ;;  %v3739_v14 = vld [vmem:[%s4357_s29 + $0x6c] ss:$16 sps:$4 sm:$0xff]   ;;  %v3741_v15 = vld [vmem:[%s4357_s29 + $0x60] ss:$16 sps:$4 sm:$0xff]  }
  0x1c   : > { %v3742_v16 = vld [vmem:[%s4357_s29 + $0x68] ss:$16 sps:$4 sm:$0xff]   ;;  %v3743_v17 = vld [vmem:[%s4357_s29 + $0x84] ss:$16 sps:$4 sm:$0xff]   ;;  %v3745_v18 = vld [vmem:[%s4357_s29 + $0x8c] ss:$16 sps:$4 sm:$0xff]  }
  0x1d   : > { %1836 = vmatpush1.bf16.msra.mxu0 %v3729_v7  ;;  %2000 = vmatpush1.bf16.msra.mxu1 %v3730_v8  ;;  %v3747_v19 = vld [vmem:[%s4357_s29 + $0x80] ss:$16 sps:$4 sm:$0xff]   ;;  %v3748_v20 = vld [vmem:[%s4357_s29 + $0x88] ss:$16 sps:$4 sm:$0xff]   ;;  %v3749_v21 = vld [vmem:[%s4357_s29 + $0xa4] ss:$16 sps:$4 sm:$0xff]  }
  0x1e   : > { %1837 = vmatprep.subr.bf16.mxu0 %v3731_v9  ;;  %2001 = vmatprep.subr.bf16.mxu1 %v3733_v10  ;;  %v3751_v22 = vld [vmem:[%s4357_s29 + $0xac] ss:$16 sps:$4 sm:$0xff]   ;;  %v3753_v23 = vld [vmem:[%s4357_s29 + $0xa0] ss:$16 sps:$4 sm:$0xff]   ;;  %v3754_v24 = vld [vmem:[%s4357_s29 + $0xa8] ss:$16 sps:$4 sm:$0xff]  }
  0x1f   : > { %v3755_v25 = vld [vmem:[%s4357_s29 + $0xc4] ss:$16 sps:$4 sm:$0xff]   ;;  %v3757_v26 = vld [vmem:[%s4357_s29 + $0xcc] ss:$16 sps:$4 sm:$0xff]   ;;  %v3759_v27 = vld [vmem:[%s4357_s29 + $0xc0] ss:$16 sps:$4 sm:$0xff]  }
  0x20   : > { %v3760_v28 = vld [vmem:[%s4357_s29 + $0xc8] ss:$16 sps:$4 sm:$0xff]   ;;  %v3761_v29 = vld [vmem:[%s4357_s29 + $0xe4] ss:$16 sps:$4 sm:$0xff]   ;;  %v3763_v30 = vld [vmem:[%s4357_s29 + $0xec] ss:$16 sps:$4 sm:$0xff]  }
  0x21   : > { %1838 = vmatpush1.bf16.msra.mxu0 %v3735_v11  ;;  %2002 = vmatpush1.bf16.msra.mxu1 %v3736_v12  ;;  %v3765_v31 = vld [vmem:[%s4357_s29 + $0xe0] ss:$16 sps:$4 sm:$0xff]   ;;  %v3766_v32 = vld [vmem:[%s4357_s29 + $0xe8] ss:$16 sps:$4 sm:$0xff]   ;;  %v3767_v33 = vld [vmem:[%s4357_s29 + $0x104] ss:$16 sps:$4 sm:$0xff]  }
  0x22   : > { %1839 = vmatprep.subr.bf16.mxu0 %v3737_v13  ;;  %2003 = vmatprep.subr.bf16.mxu1 %v3739_v14  ;;  %v3769_v34 = vld [vmem:[%s4357_s29 + $0x10c] ss:$16 sps:$4 sm:$0xff]   ;;  %v3771_v35 = vld [vmem:[%s4357_s29 + $0x100] ss:$16 sps:$4 sm:$0xff]   ;;  %v3772_v36 = vld [vmem:[%s4357_s29 + $0x108] ss:$16 sps:$4 sm:$0xff]  }
  0x23   : > { %v4306_v37 = vmov 1983009808   ;;  %v3773_v40 = vld [vmem:[%s4357_s29 + $0x124] ss:$16 sps:$4 sm:$0xff]   ;;  %v3775_v41 = vld [vmem:[%s4357_s29 + $0x12c] ss:$16 sps:$4 sm:$0xff]  }
  0x24   : > { %v249_v38 = vunpack.c.l.s4 %v4306_v37  ;;  %v3777_v42 = vld [vmem:[%s4357_s29 + $0x120] ss:$16 sps:$4 sm:$0xff]   ;;  %v4402_v44 = vshrl.u32 %v251_v39, 7  ;;  %v3778_v45 = vld [vmem:[%s4357_s29 + $0x128] ss:$16 sps:$4 sm:$0xff]   ;;  %p3541_p6 = scmp.ne.s32.totalorder %s4343_s19, 7 }
  0x25   : > { %1840 = vmatpush1.bf16.msra.mxu0 %v3741_v15  ;;  %2004 = vmatpush1.bf16.msra.mxu1 %v3742_v16  ;;  %v3779_v46 = vld [vmem:[%s4357_s29 + $0x144] ss:$16 sps:$4 sm:$0xff]   ;;  %v3781_v47 = vld [vmem:[%s4357_s29 + $0x14c] ss:$16 sps:$4 sm:$0xff]   ;;  %v3783_v48 = vld [vmem:[%s4357_s29 + $0x140] ss:$16 sps:$4 sm:$0xff]  }
  0x26   : > { %1841 = vmatprep.subr.bf16.mxu0 %v3743_v17  ;;  %2005 = vmatprep.subr.bf16.mxu1 %v3745_v18  ;;  %v250_v43 = vunpack.c.0.s8 %v249_v38  ;;  %v3784_v49 = vld [vmem:[%s4357_s29 + $0x148] ss:$16 sps:$4 sm:$0xff]   ;;  %v3785_v51 = vld [vmem:[%s4357_s29 + $0x164] ss:$16 sps:$4 sm:$0xff]   ;;  %v3787_v52 = vld [vmem:[%s4357_s29 + $0x16c] ss:$16 sps:$4 sm:$0xff]  }
  0x27   : > { %v243_v53 = vld [vmem:[%s4352_s25] sm:$0xff]  ;;  %v3790_v56 = vld [vmem:[%s4357_s29 + $0x168] ss:$16 sps:$4 sm:$0xff]   ;;  %v3793_v58 = vld [vmem:[%s4357_s29 + $0x18c] ss:$16 sps:$4 sm:$0xff]  }
  0x28   : > { %v4410_v50 = vsub.s32 %v250_v43, %v4402_v44  ;;  %v3789_v54 = vld [vmem:[%s4357_s29 + $0x160] ss:$16 sps:$4 sm:$0xff]   ;;  %v3791_v57 = vld [vmem:[%s4357_s29 + $0x184] ss:$16 sps:$4 sm:$0xff]   ;;  %v3796_v62 = vld [vmem:[%s4357_s29 + $0x188] ss:$16 sps:$4 sm:$0xff]   ;;  %v247_v5 = vcombine.high %v243_v53, %v243_v53 }
  0x29   : > { %1842 = vmatpush1.bf16.msra.mxu0 %v3747_v19  ;;  %2006 = vmatpush1.bf16.msra.mxu1 %v3748_v20  ;;  %v3795_v60 = vld [vmem:[%s4357_s29 + $0x180] ss:$16 sps:$4 sm:$0xff]   ;;  %v3797_v63 = vld [vmem:[%s4357_s29 + $0x1a4] ss:$16 sps:$4 sm:$0xff]   ;;  %v3799_v0 = vld [vmem:[%s4357_s29 + $0x1ac] ss:$16 sps:$4 sm:$0xff]  }
  0x2a   : > { %1843 = vmatprep.subr.bf16.mxu0 %v3749_v21  ;;  %2007 = vmatprep.subr.bf16.mxu1 %v3751_v22  ;;  %v254_v55 = vrot.slane %v243_v53, %v4410_v50  ;;  %v3801_v1 = vld [vmem:[%s4357_s29 + $0x1a0] ss:$16 sps:$4 sm:$0xff]   ;;  %v3802_v2 = vld [vmem:[%s4357_s29 + $0x1a8] ss:$16 sps:$4 sm:$0xff]   ;;  %v3803_v3 = vld [vmem:[%s4357_s29 + $0x1c4] ss:$16 sps:$4 sm:$0xff]   ;;  %v4433_v10 = vrot.slane %v247_v5, %v4410_v50 }
  0x2b   : > { %v3805_v4 = vld [vmem:[%s4357_s29 + $0x1cc] ss:$16 sps:$4 sm:$0xff]   ;;  %v3807_v6 = vld [vmem:[%s4357_s29 + $0x1c0] ss:$16 sps:$4 sm:$0xff]   ;;  %v3808_v7 = vld [vmem:[%s4357_s29 + $0x1c8] ss:$16 sps:$4 sm:$0xff]  }
  0x2c   : > { %v262_v59 = vcombine.high %v254_v55, %v254_v55  ;;  %v3809_v8 = vld [vmem:[%s4357_s29 + $0x1e4] ss:$16 sps:$4 sm:$0xff]   ;;  %v3811_v9 = vld [vmem:[%s4357_s29 + $0x1ec] ss:$16 sps:$4 sm:$0xff]   ;;  %v3813_v11 = vld [vmem:[%s4357_s29 + $0x1e0] ss:$16 sps:$4 sm:$0xff]   ;;  %v263_v15 = vcombine.high %v4433_v10, %v4433_v10  ;;  %v289_v17 = vpack.c.bf16 %v254_v55, %v254_v55 }
  0x2d   : > { %1844 = vmatpush1.bf16.msra.mxu0 %v3753_v23  ;;  %2008 = vmatpush1.bf16.msra.mxu1 %v3754_v24  ;;  %v3814_v12 = vld [vmem:[%s4357_s29 + $0x1e8] ss:$16 sps:$4 sm:$0xff]   ;;  %v3818_v13 = vld [vmem:[%s4357_s29 + $0x204] ss:$16 sps:$4 sm:$0xff]   ;;  %v3821_v14 = vld [vmem:[%s4357_s29 + $0x20c] ss:$16 sps:$4 sm:$0xff]  }
  0x2e   : > { %1845 = vmatprep.subr.bf16.mxu0 %v3755_v25  ;;  %2009 = vmatprep.subr.bf16.mxu1 %v3757_v26  ;;  %v290_v61 = vpack.c.bf16 %v262_v59, %v262_v59  ;;  %v3816_v16 = vld [vmem:[%s4357_s29 + $0x200] ss:$16 sps:$4 sm:$0xff]   ;;  %v3819_v18 = vld [vmem:[%s4357_s29 + $0x208] ss:$16 sps:$4 sm:$0xff]   ;;  %v3824_v19 = vld [vmem:[%s4357_s29 + $0x224] ss:$16 sps:$4 sm:$0xff]   ;;  %v292_v21 = vpack.c.bf16 %v263_v15, %v263_v15 }
  0x2f   : > { %v3827_v20 = vld [vmem:[%s4357_s29 + $0x22c] ss:$16 sps:$4 sm:$0xff]   ;;  %v3822_v22 = vld [vmem:[%s4357_s29 + $0x220] ss:$16 sps:$4 sm:$0xff]   ;;  %v3825_v23 = vld [vmem:[%s4357_s29 + $0x228] ss:$16 sps:$4 sm:$0xff]  }
  0x30   : > { %1865 = vmatprep.mubr.bf16.mxu0 %v290_v61  ;;  %2029 = vmatprep.mubr.bf16.mxu1 %v290_v61  ;;  %v3830_v24 = vld [vmem:[%s4357_s29 + $0x244] ss:$16 sps:$4 sm:$0xff]   ;;  %v3833_v25 = vld [vmem:[%s4357_s29 + $0x24c] ss:$16 sps:$4 sm:$0xff]   ;;  %v3828_v26 = vld [vmem:[%s4357_s29 + $0x240] ss:$16 sps:$4 sm:$0xff]  }
  0x31   : > { %1846 = vmatpush1.bf16.msra.mxu0 %v3759_v27  ;;  %2010 = vmatpush1.bf16.msra.mxu1 %v3760_v28  ;;  %v3831_v27 = vld [vmem:[%s4357_s29 + $0x248] ss:$16 sps:$4 sm:$0xff]   ;;  %v3836_v28 = vld [vmem:[%s4357_s29 + $0x264] ss:$16 sps:$4 sm:$0xff]   ;;  %v3851_v37 = vld [vmem:[%s4357_s29 + $0x2ac] ss:$16 sps:$4 sm:$0xff]  }
  0x32   : > { %1847 = vmatprep.subr.bf16.mxu0 %v3761_v29  ;;  %2011 = vmatprep.subr.bf16.mxu1 %v3763_v30  ;;  %v3839_v29 = vld [vmem:[%s4357_s29 + $0x26c] ss:$16 sps:$4 sm:$0xff]   ;;  %v3834_v30 = vld [vmem:[%s4357_s29 + $0x260] ss:$16 sps:$4 sm:$0xff]   ;;  %v3849_v39 = vld [vmem:[%s4357_s29 + $0x2a8] ss:$16 sps:$4 sm:$0xff]  }
  0x33   : > { %v3846_v38 = vld [vmem:[%s4357_s29 + $0x2a0] ss:$16 sps:$4 sm:$0xff]   ;;  %v3855_v43 = vld [vmem:[%s4357_s29 + $0x2c8] ss:$16 sps:$4 sm:$0xff]   ;;  %v3875_v55 = vld [vmem:[%s4357_s29 + $0x32c] ss:$16 sps:$4 sm:$0xff]  }
  0x34   : > { %v3867_v53 = vld [vmem:[%s4357_s29 + $0x308] ss:$16 sps:$4 sm:$0xff]   ;;  %v3881_v59 = vld [vmem:[%s4357_s29 + $0x34c] ss:$16 sps:$4 sm:$0xff]   ;;  %v3908_v15 = vld [vmem:[%s4357_s29 + $0x3e4] ss:$16 sps:$4 sm:$0xff]  }
  0x35   : > { %1848 = vmatpush1.bf16.msra.mxu0 %v3765_v31  ;;  %2012 = vmatpush1.bf16.msra.mxu1 %v3766_v32  ;;  %v3837_v31 = vld [vmem:[%s4357_s29 + $0x268] ss:$16 sps:$4 sm:$0xff]   ;;  %v3842_v32 = vld [vmem:[%s4357_s29 + $0x284] ss:$16 sps:$4 sm:$0xff]  }
  0x36   : > { %1849 = vmatprep.subr.bf16.mxu0 %v3767_v33  ;;  %2013 = vmatprep.subr.bf16.mxu1 %v3769_v34  ;;  %v3845_v33 = vld [vmem:[%s4357_s29 + $0x28c] ss:$16 sps:$4 sm:$0xff]   ;;  %v3840_v34 = vld [vmem:[%s4357_s29 + $0x280] ss:$16 sps:$4 sm:$0xff]   ;;  %v3879_v61 = vld [vmem:[%s4357_s29 + $0x348] ss:$16 sps:$4 sm:$0xff]  }
  0x37   : > { %v3891_v5 = vld [vmem:[%s4357_s29 + $0x388] ss:$16 sps:$4 sm:$0xff]  }
  0x39   : > { %1850 = vmatpush1.bf16.msra.mxu0 %v3771_v35  ;;  %2014 = vmatpush1.bf16.msra.mxu1 %v3772_v36  ;;  %v3843_v35 = vld [vmem:[%s4357_s29 + $0x288] ss:$16 sps:$4 sm:$0xff]   ;;  %v3848_v36 = vld [vmem:[%s4357_s29 + $0x2a4] ss:$16 sps:$4 sm:$0xff]  }
  0x3a   : > { %1851 = vmatprep.subr.bf16.mxu0 %v3773_v40  ;;  %2015 = vmatprep.subr.bf16.mxu1 %v3775_v41  ;;  %v3854_v40 = vld [vmem:[%s4357_s29 + $0x2c4] ss:$16 sps:$4 sm:$0xff]   ;;  %v3857_v41 = vld [vmem:[%s4357_s29 + $0x2cc] ss:$16 sps:$4 sm:$0xff]  }
  0x3d   : > { %1852 = vmatpush1.bf16.msra.mxu0 %v3777_v42  ;;  %2016 = vmatpush1.bf16.msra.mxu1 %v3778_v45  ;;  %v3852_v42 = vld [vmem:[%s4357_s29 + $0x2c0] ss:$16 sps:$4 sm:$0xff]   ;;  %v3860_v45 = vld [vmem:[%s4357_s29 + $0x2e4] ss:$16 sps:$4 sm:$0xff]  }
  0x3e   : > { %1853 = vmatprep.subr.bf16.mxu0 %v3779_v46  ;;  %2017 = vmatprep.subr.bf16.mxu1 %v3781_v47  ;;  %v3863_v46 = vld [vmem:[%s4357_s29 + $0x2ec] ss:$16 sps:$4 sm:$0xff]   ;;  %v3858_v47 = vld [vmem:[%s4357_s29 + $0x2e0] ss:$16 sps:$4 sm:$0xff]  }
  0x41   : > { %1854 = vmatpush1.bf16.msra.mxu0 %v3783_v48  ;;  %2018 = vmatpush1.bf16.msra.mxu1 %v3784_v49  ;;  %v3861_v48 = vld [vmem:[%s4357_s29 + $0x2e8] ss:$16 sps:$4 sm:$0xff]   ;;  %v3866_v49 = vld [vmem:[%s4357_s29 + $0x304] ss:$16 sps:$4 sm:$0xff]  }
  0x42   : > { %1855 = vmatprep.subr.bf16.mxu0 %v3785_v51  ;;  %2019 = vmatprep.subr.bf16.mxu1 %v3787_v52  ;;  %v3869_v51 = vld [vmem:[%s4357_s29 + $0x30c] ss:$16 sps:$4 sm:$0xff]   ;;  %v3864_v52 = vld [vmem:[%s4357_s29 + $0x300] ss:$16 sps:$4 sm:$0xff]  }
  0x45   : > { %1856 = vmatpush1.bf16.msra.mxu0 %v3789_v54  ;;  %2020 = vmatpush1.bf16.msra.mxu1 %v3790_v56  ;;  %v3872_v54 = vld [vmem:[%s4357_s29 + $0x324] ss:$16 sps:$4 sm:$0xff]   ;;  %v3870_v56 = vld [vmem:[%s4357_s29 + $0x320] ss:$16 sps:$4 sm:$0xff]  }
  0x46   : > { %1857 = vmatprep.subr.bf16.mxu0 %v3791_v57  ;;  %2021 = vmatprep.subr.bf16.mxu1 %v3793_v58  ;;  %v3873_v57 = vld [vmem:[%s4357_s29 + $0x328] ss:$16 sps:$4 sm:$0xff]   ;;  %v3878_v58 = vld [vmem:[%s4357_s29 + $0x344] ss:$16 sps:$4 sm:$0xff]  }
  0x49   : > { %1858 = vmatpush1.bf16.msra.mxu0 %v3795_v60  ;;  %2022 = vmatpush1.bf16.msra.mxu1 %v3796_v62  ;;  %v3876_v60 = vld [vmem:[%s4357_s29 + $0x340] ss:$16 sps:$4 sm:$0xff]   ;;  %v3884_v62 = vld [vmem:[%s4357_s29 + $0x364] ss:$16 sps:$4 sm:$0xff]  }
  0x4a   : > { %1859 = vmatprep.subr.bf16.mxu0 %v3797_v63  ;;  %2023 = vmatprep.subr.bf16.mxu1 %v3799_v0  ;;  %v3887_v63 = vld [vmem:[%s4357_s29 + $0x36c] ss:$16 sps:$4 sm:$0xff]   ;;  %v3882_v0 = vld [vmem:[%s4357_s29 + $0x360] ss:$16 sps:$4 sm:$0xff]  }
  0x4d   : > { %1860 = vmatpush1.bf16.msra.mxu0 %v3801_v1  ;;  %2024 = vmatpush1.bf16.msra.mxu1 %v3802_v2  ;;  %v3885_v1 = vld [vmem:[%s4357_s29 + $0x368] ss:$16 sps:$4 sm:$0xff]   ;;  %v3890_v2 = vld [vmem:[%s4357_s29 + $0x384] ss:$16 sps:$4 sm:$0xff]  }
  0x4e   : > { %1861 = vmatprep.subr.bf16.mxu0 %v3803_v3  ;;  %2025 = vmatprep.subr.bf16.mxu1 %v3805_v4  ;;  %v3893_v3 = vld [vmem:[%s4357_s29 + $0x38c] ss:$16 sps:$4 sm:$0xff]   ;;  %v3888_v4 = vld [vmem:[%s4357_s29 + $0x380] ss:$16 sps:$4 sm:$0xff]  }
  0x51   : > { %1862 = vmatpush1.bf16.msra.mxu0 %v3807_v6  ;;  %2026 = vmatpush1.bf16.msra.mxu1 %v3808_v7  ;;  %v3896_v6 = vld [vmem:[%s4357_s29 + $0x3a4] ss:$16 sps:$4 sm:$0xff]   ;;  %v3899_v7 = vld [vmem:[%s4357_s29 + $0x3ac] ss:$16 sps:$4 sm:$0xff]  }
  0x52   : > { %1863 = vmatprep.subr.bf16.mxu0 %v3809_v8  ;;  %2027 = vmatprep.subr.bf16.mxu1 %v3811_v9  ;;  %v3894_v8 = vld [vmem:[%s4357_s29 + $0x3a0] ss:$16 sps:$4 sm:$0xff]   ;;  %v3897_v9 = vld [vmem:[%s4357_s29 + $0x3a8] ss:$16 sps:$4 sm:$0xff]  }
  0x55   : > { %1864 = vmatpush1.bf16.msra.mxu0 %v3813_v11  ;;  %2028 = vmatpush1.bf16.msra.mxu1 %v3814_v12  ;;  %v3902_v11 = vld [vmem:[%s4357_s29 + $0x3c4] ss:$16 sps:$4 sm:$0xff]   ;;  %v3905_v12 = vld [vmem:[%s4357_s29 + $0x3cc] ss:$16 sps:$4 sm:$0xff]  }
  0x56   : > { %1874 = vmatprep.subr.bf16.mxu0 %v3818_v13  ;;  %2038 = vmatprep.subr.bf16.mxu1 %v3821_v14  ;;  %v3900_v13 = vld [vmem:[%s4357_s29 + $0x3c0] ss:$16 sps:$4 sm:$0xff]   ;;  %v3903_v14 = vld [vmem:[%s4357_s29 + $0x3c8] ss:$16 sps:$4 sm:$0xff]  }
  0x58   : > { %1866 = vmatmul.mubr.bf16.vlgmr.msra.gmra.mrb[0].mxu0 %v289_v17  ;;  %2030 = vmatmul.mubr.bf16.vlgmr.msra.gmra.mrb[0].mxu1 %v289_v17  ;;  %v3906_v17 = vld [vmem:[%s4357_s29 + $0x3e0] ss:$16 sps:$4 sm:$0xff]  }
  0x59   : > { %1875 = vmatpush1.bf16.msra.mxu0 %v3816_v16  ;;  %2039 = vmatpush1.bf16.msra.mxu1 %v3819_v18  ;;  %v3911_v16 = vld [vmem:[%s4357_s29 + $0x3ec] ss:$16 sps:$4 sm:$0xff]   ;;  %v3909_v18 = vld [vmem:[%s4357_s29 + $0x3e8] ss:$16 sps:$4 sm:$0xff]  }
  0x5a   : > { %1876 = vmatprep.subr.bf16.mxu0 %v3824_v19  ;;  %2040 = vmatprep.subr.bf16.mxu1 %v3827_v20  ;;  %v3914_v19 = vld [vmem:[%s4357_s29 + $0x404] ss:$16 sps:$4 sm:$0xff]   ;;  %v3917_v20 = vld [vmem:[%s4357_s29 + $0x40c] ss:$16 sps:$4 sm:$0xff]  }
  0x5b   : > { %1906 = vmatprep.mubr.bf16.mxu0 %v292_v21  ;;  %2070 = vmatprep.mubr.bf16.mxu1 %v292_v21  ;;  %v3912_v21 = vld [vmem:[%s4357_s29 + $0x400] ss:$16 sps:$4 sm:$0xff]  }
  0x5d   : > { %1877 = vmatpush1.bf16.msra.mxu0 %v3822_v22  ;;  %2041 = vmatpush1.bf16.msra.mxu1 %v3825_v23  ;;  %v291_v22 = vpack.c.bf16 %v4433_v10, %v4433_v10  ;;  %v3915_v23 = vld [vmem:[%s4357_s29 + $0x408] ss:$16 sps:$4 sm:$0xff]  }
  0x5e   : > { %1878 = vmatprep.subr.bf16.mxu0 %v3830_v24  ;;  %2042 = vmatprep.subr.bf16.mxu1 %v3833_v25  ;;  %v4510_v24 = vld [vmem:[%s4352_s25 + $0x8] sm:$0xff]  ;;  %v3920_v25 = vld [vmem:[%s4357_s29 + $0x424] ss:$16 sps:$4 sm:$0xff]  }
  0x61   : > { %1879 = vmatpush1.bf16.msra.mxu0 %v3828_v26  ;;  %2043 = vmatpush1.bf16.msra.mxu1 %v3831_v27  ;;  %v3923_v26 = vld [vmem:[%s4357_s29 + $0x42c] ss:$16 sps:$4 sm:$0xff]   ;;  %v4516_v27 = vrot.slane %v4510_v24, %v4410_v50 }
  0x62   : > { %1880 = vmatprep.subr.bf16.mxu0 %v3836_v28  ;;  %2044 = vmatprep.subr.bf16.mxu1 %v3839_v29  ;;  %v3918_v28 = vld [vmem:[%s4357_s29 + $0x420] ss:$16 sps:$4 sm:$0xff]   ;;  %v3921_v29 = vld [vmem:[%s4357_s29 + $0x428] ss:$16 sps:$4 sm:$0xff]  }
  0x63   : > { %v279_v10 = vcombine.high %v4516_v27, %v4516_v27 }
  0x65   : > { %1881 = vmatpush1.bf16.msra.mxu0 %v3834_v30  ;;  %2045 = vmatpush1.bf16.msra.mxu1 %v3837_v31  ;;  %v3926_v30 = vld [vmem:[%s4357_s29 + $0x444] ss:$16 sps:$4 sm:$0xff]   ;;  %v3929_v31 = vld [vmem:[%s4357_s29 + $0x44c] ss:$16 sps:$4 sm:$0xff]  }
  0x66   : > { %1882 = vmatprep.subr.bf16.mxu0 %v3842_v32  ;;  %2046 = vmatprep.subr.bf16.mxu1 %v3845_v33  ;;  %v294_v32 = vpack.c.bf16 %v279_v10, %v279_v10  ;;  %v3924_v33 = vld [vmem:[%s4357_s29 + $0x440] ss:$16 sps:$4 sm:$0xff]   ;;  %v4005_v10 = vld [vmem:[%s4357_s29 + $0x5e8] ss:$16 sps:$4 sm:$0xff]  }
  0x69   : > { %1883 = vmatpush1.bf16.msra.mxu0 %v3840_v34  ;;  %2047 = vmatpush1.bf16.msra.mxu1 %v3843_v35  ;;  %v3927_v34 = vld [vmem:[%s4357_s29 + $0x448] ss:$16 sps:$4 sm:$0xff]   ;;  %v3932_v35 = vld [vmem:[%s4357_s29 + $0x464] ss:$16 sps:$4 sm:$0xff]  }
  0x6a   : > { %1884 = vmatprep.subr.bf16.mxu0 %v3848_v36  ;;  %2048 = vmatprep.subr.bf16.mxu1 %v3851_v37  ;;  %v3935_v36 = vld [vmem:[%s4357_s29 + $0x46c] ss:$16 sps:$4 sm:$0xff]   ;;  %v3930_v37 = vld [vmem:[%s4357_s29 + $0x460] ss:$16 sps:$4 sm:$0xff]  }
  0x6d   : > { %1885 = vmatpush1.bf16.msra.mxu0 %v3846_v38  ;;  %2049 = vmatpush1.bf16.msra.mxu1 %v3849_v39  ;;  %v3933_v38 = vld [vmem:[%s4357_s29 + $0x468] ss:$16 sps:$4 sm:$0xff]   ;;  %v3938_v39 = vld [vmem:[%s4357_s29 + $0x484] ss:$16 sps:$4 sm:$0xff]  }
  0x6e   : > { %1886 = vmatprep.subr.bf16.mxu0 %v3854_v40  ;;  %2050 = vmatprep.subr.bf16.mxu1 %v3857_v41  ;;  %v3941_v40 = vld [vmem:[%s4357_s29 + $0x48c] ss:$16 sps:$4 sm:$0xff]   ;;  %v3936_v41 = vld [vmem:[%s4357_s29 + $0x480] ss:$16 sps:$4 sm:$0xff]  }
  0x71   : > { %1887 = vmatpush1.bf16.msra.mxu0 %v3852_v42  ;;  %2051 = vmatpush1.bf16.msra.mxu1 %v3855_v43  ;;  %v3939_v42 = vld [vmem:[%s4357_s29 + $0x488] ss:$16 sps:$4 sm:$0xff]   ;;  %v3944_v43 = vld [vmem:[%s4357_s29 + $0x4a4] ss:$16 sps:$4 sm:$0xff]  }
  0x72   : > { %1888 = vmatprep.subr.bf16.mxu0 %v3860_v45  ;;  %2052 = vmatprep.subr.bf16.mxu1 %v3863_v46  ;;  %v3947_v45 = vld [vmem:[%s4357_s29 + $0x4ac] ss:$16 sps:$4 sm:$0xff]   ;;  %v3942_v46 = vld [vmem:[%s4357_s29 + $0x4a0] ss:$16 sps:$4 sm:$0xff]  }
  0x75   : > { %1889 = vmatpush1.bf16.msra.mxu0 %v3858_v47  ;;  %2053 = vmatpush1.bf16.msra.mxu1 %v3861_v48  ;;  %v3945_v47 = vld [vmem:[%s4357_s29 + $0x4a8] ss:$16 sps:$4 sm:$0xff]   ;;  %v3950_v48 = vld [vmem:[%s4357_s29 + $0x4c4] ss:$16 sps:$4 sm:$0xff]  }
  0x76   : > { %1890 = vmatprep.subr.bf16.mxu0 %v3866_v49  ;;  %2054 = vmatprep.subr.bf16.mxu1 %v3869_v51  ;;  %v3953_v49 = vld [vmem:[%s4357_s29 + $0x4cc] ss:$16 sps:$4 sm:$0xff]   ;;  %v3948_v51 = vld [vmem:[%s4357_s29 + $0x4c0] ss:$16 sps:$4 sm:$0xff]  }
  0x79   : > { %1891 = vmatpush1.bf16.msra.mxu0 %v3864_v52  ;;  %2055 = vmatpush1.bf16.msra.mxu1 %v3867_v53  ;;  %v3951_v52 = vld [vmem:[%s4357_s29 + $0x4c8] ss:$16 sps:$4 sm:$0xff]   ;;  %v3956_v53 = vld [vmem:[%s4357_s29 + $0x4e4] ss:$16 sps:$4 sm:$0xff]  }
  0x7a   : > { %1892 = vmatprep.subr.bf16.mxu0 %v3872_v54  ;;  %2056 = vmatprep.subr.bf16.mxu1 %v3875_v55  ;;  %v3959_v54 = vld [vmem:[%s4357_s29 + $0x4ec] ss:$16 sps:$4 sm:$0xff]   ;;  %v3954_v55 = vld [vmem:[%s4357_s29 + $0x4e0] ss:$16 sps:$4 sm:$0xff]  }
  0x7d   : > { %1893 = vmatpush1.bf16.msra.mxu0 %v3870_v56  ;;  %2057 = vmatpush1.bf16.msra.mxu1 %v3873_v57  ;;  %v3957_v56 = vld [vmem:[%s4357_s29 + $0x4e8] ss:$16 sps:$4 sm:$0xff]   ;;  %v3962_v57 = vld [vmem:[%s4357_s29 + $0x504] ss:$16 sps:$4 sm:$0xff]  }
  0x7e   : > { %1894 = vmatprep.subr.bf16.mxu0 %v3878_v58  ;;  %2058 = vmatprep.subr.bf16.mxu1 %v3881_v59  ;;  %v3965_v58 = vld [vmem:[%s4357_s29 + $0x50c] ss:$16 sps:$4 sm:$0xff]   ;;  %v3960_v59 = vld [vmem:[%s4357_s29 + $0x500] ss:$16 sps:$4 sm:$0xff]  }
  0x81   : > { %1895 = vmatpush1.bf16.msra.mxu0 %v3876_v60  ;;  %2059 = vmatpush1.bf16.msra.mxu1 %v3879_v61  ;;  %v3963_v60 = vld [vmem:[%s4357_s29 + $0x508] ss:$16 sps:$4 sm:$0xff]   ;;  %v3968_v61 = vld [vmem:[%s4357_s29 + $0x524] ss:$16 sps:$4 sm:$0xff]  }
  0x82   : > { %1896 = vmatprep.subr.bf16.mxu0 %v3884_v62  ;;  %2060 = vmatprep.subr.bf16.mxu1 %v3887_v63  ;;  %v3971_v62 = vld [vmem:[%s4357_s29 + $0x52c] ss:$16 sps:$4 sm:$0xff]   ;;  %v3966_v63 = vld [vmem:[%s4357_s29 + $0x520] ss:$16 sps:$4 sm:$0xff]  }
  0x85   : > { %1897 = vmatpush1.bf16.msra.mxu0 %v3882_v0  ;;  %2061 = vmatpush1.bf16.msra.mxu1 %v3885_v1  ;;  %v3969_v0 = vld [vmem:[%s4357_s29 + $0x528] ss:$16 sps:$4 sm:$0xff]   ;;  %v3974_v1 = vld [vmem:[%s4357_s29 + $0x544] ss:$16 sps:$4 sm:$0xff]  }
  0x86   : > { %1898 = vmatprep.subr.bf16.mxu0 %v3890_v2  ;;  %2062 = vmatprep.subr.bf16.mxu1 %v3893_v3  ;;  %v3977_v2 = vld [vmem:[%s4357_s29 + $0x54c] ss:$16 sps:$4 sm:$0xff]   ;;  %v3972_v3 = vld [vmem:[%s4357_s29 + $0x540] ss:$16 sps:$4 sm:$0xff]  }
  0x89   : > { %1899 = vmatpush1.bf16.msra.mxu0 %v3888_v4  ;;  %2063 = vmatpush1.bf16.msra.mxu1 %v3891_v5  ;;  %v3975_v4 = vld [vmem:[%s4357_s29 + $0x548] ss:$16 sps:$4 sm:$0xff]   ;;  %v3980_v5 = vld [vmem:[%s4357_s29 + $0x564] ss:$16 sps:$4 sm:$0xff]  }
  0x8a   : > { %1900 = vmatprep.subr.bf16.mxu0 %v3896_v6  ;;  %2064 = vmatprep.subr.bf16.mxu1 %v3899_v7  ;;  %v3983_v6 = vld [vmem:[%s4357_s29 + $0x56c] ss:$16 sps:$4 sm:$0xff]   ;;  %v3978_v7 = vld [vmem:[%s4357_s29 + $0x560] ss:$16 sps:$4 sm:$0xff]  }
  0x8d   : > { %1901 = vmatpush1.bf16.msra.mxu0 %v3894_v8  ;;  %2065 = vmatpush1.bf16.msra.mxu1 %v3897_v9  ;;  %v3981_v8 = vld [vmem:[%s4357_s29 + $0x568] ss:$16 sps:$4 sm:$0xff]   ;;  %v3986_v9 = vld [vmem:[%s4357_s29 + $0x584] ss:$16 sps:$4 sm:$0xff]  }
  0x8e   : > { %1902 = vmatprep.subr.bf16.mxu0 %v3902_v11  ;;  %2066 = vmatprep.subr.bf16.mxu1 %v3905_v12  ;;  %v3989_v11 = vld [vmem:[%s4357_s29 + $0x58c] ss:$16 sps:$4 sm:$0xff]   ;;  %v3984_v12 = vld [vmem:[%s4357_s29 + $0x580] ss:$16 sps:$4 sm:$0xff]  }
  0x91   : > { %1903 = vmatpush1.bf16.msra.mxu0 %v3900_v13  ;;  %2067 = vmatpush1.bf16.msra.mxu1 %v3903_v14  ;;  %v3987_v13 = vld [vmem:[%s4357_s29 + $0x588] ss:$16 sps:$4 sm:$0xff]   ;;  %v3992_v14 = vld [vmem:[%s4357_s29 + $0x5a4] ss:$16 sps:$4 sm:$0xff]  }
  0x92   : > { %1904 = vmatprep.subr.bf16.mxu0 %v3908_v15  ;;  %2068 = vmatprep.subr.bf16.mxu1 %v3911_v16  ;;  %v3995_v15 = vld [vmem:[%s4357_s29 + $0x5ac] ss:$16 sps:$4 sm:$0xff]   ;;  %v3990_v16 = vld [vmem:[%s4357_s29 + $0x5a0] ss:$16 sps:$4 sm:$0xff]  }
  0x95   : > { %1905 = vmatpush1.bf16.msra.mxu0 %v3906_v17  ;;  %2069 = vmatpush1.bf16.msra.mxu1 %v3909_v18  ;;  %v3993_v17 = vld [vmem:[%s4357_s29 + $0x5a8] ss:$16 sps:$4 sm:$0xff]   ;;  %v3998_v18 = vld [vmem:[%s4357_s29 + $0x5c4] ss:$16 sps:$4 sm:$0xff]  }
  0x96   : > { %1915 = vmatprep.subr.bf16.mxu0 %v3914_v19  ;;  %2079 = vmatprep.subr.bf16.mxu1 %v3917_v20  ;;  %v4001_v19 = vld [vmem:[%s4357_s29 + $0x5cc] ss:$16 sps:$4 sm:$0xff]   ;;  %v264_v20 = vcombine.high %v4510_v24, %v4510_v24  ;;  %v4002_v24 = vld [vmem:[%s4357_s29 + $0x5e0] ss:$16 sps:$4 sm:$0xff]  }
  0x98   : > { %1907 = vmatmul.mubr.bf16.vlgmr.msra.gmra.mrb[0].mxu0 %v291_v22  ;;  %2071 = vmatmul.mubr.bf16.vlgmr.msra.gmra.mrb[0].mxu1 %v291_v22  ;;  %v3999_v22 = vld [vmem:[%s4357_s29 + $0x5c8] ss:$16 sps:$4 sm:$0xff]  }
  0x99   : > { %1916 = vmatpush1.bf16.msra.mxu0 %v3912_v21  ;;  %2080 = vmatpush1.bf16.msra.mxu1 %v3915_v23  ;;  %v3996_v21 = vld [vmem:[%s4357_s29 + $0x5c0] ss:$16 sps:$4 sm:$0xff]   ;;  %v4004_v23 = vld [vmem:[%s4357_s29 + $0x5e4] ss:$16 sps:$4 sm:$0xff]  }
  0x9a   : > { %1917 = vmatprep.subr.bf16.mxu0 %v3920_v25  ;;  %2081 = vmatprep.subr.bf16.mxu1 %v3923_v26  ;;  %v4007_v25 = vld [vmem:[%s4357_s29 + $0x5ec] ss:$16 sps:$4 sm:$0xff]   ;;  %v4579_v26 = vrot.slane %v264_v20, %v4410_v50  ;;  %v4083_v20 = vld [vmem:[%s4357_s29 + $0x788] ss:$16 sps:$4 sm:$0xff]  }
  0x9b   : > { %1947 = vmatprep.mubr.bf16.mxu0 %v294_v32  ;;  %2111 = vmatprep.mubr.bf16.mxu1 %v294_v32  ;;  %v4008_v32 = vld [vmem:[%s4357_s29 + $0x600] ss:$16 sps:$4 sm:$0xff]  }
  0x9d   : > { %1918 = vmatpush1.bf16.msra.mxu0 %v3918_v28  ;;  %2082 = vmatpush1.bf16.msra.mxu1 %v3921_v29  ;;  %v4010_v28 = vld [vmem:[%s4357_s29 + $0x604] ss:$16 sps:$4 sm:$0xff]   ;;  %v4013_v29 = vld [vmem:[%s4357_s29 + $0x60c] ss:$16 sps:$4 sm:$0xff]  }
  0x9e   : > { %1919 = vmatprep.subr.bf16.mxu0 %v3926_v30  ;;  %2083 = vmatprep.subr.bf16.mxu1 %v3929_v31  ;;  %v280_v30 = vcombine.high %v4579_v26, %v4579_v26  ;;  %v293_v31 = vpack.c.bf16 %v4516_v27, %v4516_v27  ;;  %v4014_v27 = vld [vmem:[%s4357_s29 + $0x620] ss:$16 sps:$4 sm:$0xff]  }
  0xa1   : > { %1920 = vmatpush1.bf16.msra.mxu0 %v3924_v33  ;;  %2084 = vmatpush1.bf16.msra.mxu1 %v3927_v34  ;;  %v4011_v33 = vld [vmem:[%s4357_s29 + $0x608] ss:$16 sps:$4 sm:$0xff]   ;;  %v4016_v34 = vld [vmem:[%s4357_s29 + $0x624] ss:$16 sps:$4 sm:$0xff]  }
  0xa2   : > { %1921 = vmatprep.subr.bf16.mxu0 %v3932_v35  ;;  %2085 = vmatprep.subr.bf16.mxu1 %v3935_v36  ;;  %v4019_v35 = vld [vmem:[%s4357_s29 + $0x62c] ss:$16 sps:$4 sm:$0xff]   ;;  %v296_v36 = vpack.c.bf16 %v280_v30, %v280_v30  ;;  %v4100_v30 = vld [vmem:[%s4357_s29 + $0x7e4] ss:$16 sps:$4 sm:$0xff]  }
  0xa5   : > { %1922 = vmatpush1.bf16.msra.mxu0 %v3930_v37  ;;  %2086 = vmatpush1.bf16.msra.mxu1 %v3933_v38  ;;  %v4017_v37 = vld [vmem:[%s4357_s29 + $0x628] ss:$16 sps:$4 sm:$0xff]   ;;  %v4022_v38 = vld [vmem:[%s4357_s29 + $0x644] ss:$16 sps:$4 sm:$0xff]  }
  0xa6   : > { %1923 = vmatprep.subr.bf16.mxu0 %v3938_v39  ;;  %2087 = vmatprep.subr.bf16.mxu1 %v3941_v40  ;;  %v4025_v39 = vld [vmem:[%s4357_s29 + $0x64c] ss:$16 sps:$4 sm:$0xff]   ;;  %v4020_v40 = vld [vmem:[%s4357_s29 + $0x640] ss:$16 sps:$4 sm:$0xff]  }
  0xa9   : > { %1924 = vmatpush1.bf16.msra.mxu0 %v3936_v41  ;;  %2088 = vmatpush1.bf16.msra.mxu1 %v3939_v42  ;;  %v4023_v41 = vld [vmem:[%s4357_s29 + $0x648] ss:$16 sps:$4 sm:$0xff]   ;;  %v4028_v42 = vld [vmem:[%s4357_s29 + $0x664] ss:$16 sps:$4 sm:$0xff]  }
  0xaa   : > { %1925 = vmatprep.subr.bf16.mxu0 %v3944_v43  ;;  %2089 = vmatprep.subr.bf16.mxu1 %v3947_v45  ;;  %v4031_v43 = vld [vmem:[%s4357_s29 + $0x66c] ss:$16 sps:$4 sm:$0xff]   ;;  %v4026_v45 = vld [vmem:[%s4357_s29 + $0x660] ss:$16 sps:$4 sm:$0xff]  }
  0xad   : > { %1926 = vmatpush1.bf16.msra.mxu0 %v3942_v46  ;;  %2090 = vmatpush1.bf16.msra.mxu1 %v3945_v47  ;;  %v4029_v46 = vld [vmem:[%s4357_s29 + $0x668] ss:$16 sps:$4 sm:$0xff]   ;;  %v4034_v47 = vld [vmem:[%s4357_s29 + $0x684] ss:$16 sps:$4 sm:$0xff]  }
  0xae   : > { %1927 = vmatprep.subr.bf16.mxu0 %v3950_v48  ;;  %2091 = vmatprep.subr.bf16.mxu1 %v3953_v49  ;;  %v4037_v48 = vld [vmem:[%s4357_s29 + $0x68c] ss:$16 sps:$4 sm:$0xff]   ;;  %v4032_v49 = vld [vmem:[%s4357_s29 + $0x680] ss:$16 sps:$4 sm:$0xff]  }
  0xb1   : > { %1928 = vmatpush1.bf16.msra.mxu0 %v3948_v51  ;;  %2092 = vmatpush1.bf16.msra.mxu1 %v3951_v52  ;;  %v4035_v51 = vld [vmem:[%s4357_s29 + $0x688] ss:$16 sps:$4 sm:$0xff]   ;;  %v4040_v52 = vld [vmem:[%s4357_s29 + $0x6a4] ss:$16 sps:$4 sm:$0xff]  }
  0xb2   : > { %1929 = vmatprep.subr.bf16.mxu0 %v3956_v53  ;;  %2093 = vmatprep.subr.bf16.mxu1 %v3959_v54  ;;  %v4043_v53 = vld [vmem:[%s4357_s29 + $0x6ac] ss:$16 sps:$4 sm:$0xff]   ;;  %v4038_v54 = vld [vmem:[%s4357_s29 + $0x6a0] ss:$16 sps:$4 sm:$0xff]  }
  0xb5   : > { %1930 = vmatpush1.bf16.msra.mxu0 %v3954_v55  ;;  %2094 = vmatpush1.bf16.msra.mxu1 %v3957_v56  ;;  %v4041_v55 = vld [vmem:[%s4357_s29 + $0x6a8] ss:$16 sps:$4 sm:$0xff]   ;;  %v4046_v56 = vld [vmem:[%s4357_s29 + $0x6c4] ss:$16 sps:$4 sm:$0xff]  }
  0xb6   : > { %1931 = vmatprep.subr.bf16.mxu0 %v3962_v57  ;;  %2095 = vmatprep.subr.bf16.mxu1 %v3965_v58  ;;  %v4049_v57 = vld [vmem:[%s4357_s29 + $0x6cc] ss:$16 sps:$4 sm:$0xff]   ;;  %v4044_v58 = vld [vmem:[%s4357_s29 + $0x6c0] ss:$16 sps:$4 sm:$0xff]  }
  0xb9   : > { %1932 = vmatpush1.bf16.msra.mxu0 %v3960_v59  ;;  %2096 = vmatpush1.bf16.msra.mxu1 %v3963_v60  ;;  %v4047_v59 = vld [vmem:[%s4357_s29 + $0x6c8] ss:$16 sps:$4 sm:$0xff]   ;;  %v4052_v60 = vld [vmem:[%s4357_s29 + $0x6e4] ss:$16 sps:$4 sm:$0xff]  }
  0xba   : > { %1933 = vmatprep.subr.bf16.mxu0 %v3968_v61  ;;  %2097 = vmatprep.subr.bf16.mxu1 %v3971_v62  ;;  %v4055_v61 = vld [vmem:[%s4357_s29 + $0x6ec] ss:$16 sps:$4 sm:$0xff]   ;;  %v4050_v62 = vld [vmem:[%s4357_s29 + $0x6e0] ss:$16 sps:$4 sm:$0xff]  }
  0xbd   : > { %1934 = vmatpush1.bf16.msra.mxu0 %v3966_v63  ;;  %2098 = vmatpush1.bf16.msra.mxu1 %v3969_v0  ;;  %v4053_v63 = vld [vmem:[%s4357_s29 + $0x6e8] ss:$16 sps:$4 sm:$0xff]   ;;  %v4058_v0 = vld [vmem:[%s4357_s29 + $0x704] ss:$16 sps:$4 sm:$0xff]  }
  0xbe   : > { %1935 = vmatprep.subr.bf16.mxu0 %v3974_v1  ;;  %2099 = vmatprep.subr.bf16.mxu1 %v3977_v2  ;;  %v4061_v1 = vld [vmem:[%s4357_s29 + $0x70c] ss:$16 sps:$4 sm:$0xff]   ;;  %v4056_v2 = vld [vmem:[%s4357_s29 + $0x700] ss:$16 sps:$4 sm:$0xff]  }
  0xc1   : > { %1936 = vmatpush1.bf16.msra.mxu0 %v3972_v3  ;;  %2100 = vmatpush1.bf16.msra.mxu1 %v3975_v4  ;;  %v4059_v3 = vld [vmem:[%s4357_s29 + $0x708] ss:$16 sps:$4 sm:$0xff]   ;;  %v4064_v4 = vld [vmem:[%s4357_s29 + $0x724] ss:$16 sps:$4 sm:$0xff]  }
  0xc2   : > { %1937 = vmatprep.subr.bf16.mxu0 %v3980_v5  ;;  %2101 = vmatprep.subr.bf16.mxu1 %v3983_v6  ;;  %v4067_v5 = vld [vmem:[%s4357_s29 + $0x72c] ss:$16 sps:$4 sm:$0xff]   ;;  %v4062_v6 = vld [vmem:[%s4357_s29 + $0x720] ss:$16 sps:$4 sm:$0xff]  }
  0xc5   : > { %1938 = vmatpush1.bf16.msra.mxu0 %v3978_v7  ;;  %2102 = vmatpush1.bf16.msra.mxu1 %v3981_v8  ;;  %v4065_v7 = vld [vmem:[%s4357_s29 + $0x728] ss:$16 sps:$4 sm:$0xff]   ;;  %v4070_v8 = vld [vmem:[%s4357_s29 + $0x744] ss:$16 sps:$4 sm:$0xff]  }
  0xc6   : > { %1939 = vmatprep.subr.bf16.mxu0 %v3986_v9  ;;  %2103 = vmatprep.subr.bf16.mxu1 %v3989_v11  ;;  %v4073_v9 = vld [vmem:[%s4357_s29 + $0x74c] ss:$16 sps:$4 sm:$0xff]   ;;  %v4068_v11 = vld [vmem:[%s4357_s29 + $0x740] ss:$16 sps:$4 sm:$0xff]  }
  0xc9   : > { %1940 = vmatpush1.bf16.msra.mxu0 %v3984_v12  ;;  %2104 = vmatpush1.bf16.msra.mxu1 %v3987_v13  ;;  %v4071_v12 = vld [vmem:[%s4357_s29 + $0x748] ss:$16 sps:$4 sm:$0xff]   ;;  %v4076_v13 = vld [vmem:[%s4357_s29 + $0x764] ss:$16 sps:$4 sm:$0xff]  }
  0xca   : > { %1941 = vmatprep.subr.bf16.mxu0 %v3992_v14  ;;  %2105 = vmatprep.subr.bf16.mxu1 %v3995_v15  ;;  %v4079_v14 = vld [vmem:[%s4357_s29 + $0x76c] ss:$16 sps:$4 sm:$0xff]   ;;  %v4074_v15 = vld [vmem:[%s4357_s29 + $0x760] ss:$16 sps:$4 sm:$0xff]  }
  0xcd   : > { %1942 = vmatpush1.bf16.msra.mxu0 %v3990_v16  ;;  %2106 = vmatpush1.bf16.msra.mxu1 %v3993_v17  ;;  %v4077_v16 = vld [vmem:[%s4357_s29 + $0x768] ss:$16 sps:$4 sm:$0xff]   ;;  %v4082_v17 = vld [vmem:[%s4357_s29 + $0x784] ss:$16 sps:$4 sm:$0xff]  }
  0xce   : > { %1943 = vmatprep.subr.bf16.mxu0 %v3998_v18  ;;  %2107 = vmatprep.subr.bf16.mxu1 %v4001_v19  ;;  %v4085_v18 = vld [vmem:[%s4357_s29 + $0x78c] ss:$16 sps:$4 sm:$0xff]   ;;  %v4080_v19 = vld [vmem:[%s4357_s29 + $0x780] ss:$16 sps:$4 sm:$0xff]  }
  0xd1   : > { %1944 = vmatpush1.bf16.msra.mxu0 %v3996_v21  ;;  %2108 = vmatpush1.bf16.msra.mxu1 %v3999_v22  ;;  %v4088_v21 = vld [vmem:[%s4357_s29 + $0x7a4] ss:$16 sps:$4 sm:$0xff]   ;;  %v4091_v22 = vld [vmem:[%s4357_s29 + $0x7ac] ss:$16 sps:$4 sm:$0xff]  }
  0xd2   : > { %1945 = vmatprep.subr.bf16.mxu0 %v4004_v23  ;;  %2109 = vmatprep.subr.bf16.mxu1 %v4007_v25  ;;  %v4086_v23 = vld [vmem:[%s4357_s29 + $0x7a0] ss:$16 sps:$4 sm:$0xff]   ;;  %v4089_v25 = vld [vmem:[%s4357_s29 + $0x7a8] ss:$16 sps:$4 sm:$0xff]  }
  0xd5   : > { %1946 = vmatpush1.bf16.msra.mxu0 %v4002_v24  ;;  %2110 = vmatpush1.bf16.msra.mxu1 %v4005_v10  ;;  %v4094_v24 = vld [vmem:[%s4357_s29 + $0x7c4] ss:$16 sps:$4 sm:$0xff]   ;;  %v4097_v10 = vld [vmem:[%s4357_s29 + $0x7cc] ss:$16 sps:$4 sm:$0xff]  }
  0xd6   : > { %1956 = vmatprep.subr.bf16.mxu0 %v4010_v28  ;;  %2120 = vmatprep.subr.bf16.mxu1 %v4013_v29  ;;  %v4092_v28 = vld [vmem:[%s4357_s29 + $0x7c0] ss:$16 sps:$4 sm:$0xff]   ;;  %v4095_v29 = vld [vmem:[%s4357_s29 + $0x7c8] ss:$16 sps:$4 sm:$0xff]  }
  0xd8   : > { %1948 = vmatmul.mubr.bf16.vlgmr.msra.gmra.mrb[0].mxu0 %v293_v31  ;;  %2112 = vmatmul.mubr.bf16.vlgmr.msra.gmra.mrb[0].mxu1 %v293_v31  ;;  %v4103_v31 = vld [vmem:[%s4357_s29 + $0x7ec] ss:$16 sps:$4 sm:$0xff]  }
  0xd9   : > { %1957 = vmatpush1.bf16.msra.mxu0 %v4008_v32  ;;  %2121 = vmatpush1.bf16.msra.mxu1 %v4011_v33  ;;  %v4098_v32 = vld [vmem:[%s4357_s29 + $0x7e0] ss:$16 sps:$4 sm:$0xff]   ;;  %v4101_v33 = vld [vmem:[%s4357_s29 + $0x7e8] ss:$16 sps:$4 sm:$0xff]  }
  0xda   : > { %1958 = vmatprep.subr.bf16.mxu0 %v4016_v34  ;;  %2122 = vmatprep.subr.bf16.mxu1 %v4019_v35  ;;  %v295_v34 = vpack.c.bf16 %v4579_v26, %v4579_v26  ;;  %v242_v26 = vld [vmem:[%s5098_s5] sm:$0xff] }
  0xdb   : > { %1988 = vmatprep.mubr.bf16.mxu0 %v296_v36  ;;  %2152 = vmatprep.mubr.bf16.mxu1 %v296_v36 }
  0xdd   : > { %1959 = vmatpush1.bf16.msra.mxu0 %v4014_v27  ;;  %2123 = vmatpush1.bf16.msra.mxu1 %v4017_v37 }
  0xde   : > { %1960 = vmatprep.subr.bf16.mxu0 %v4022_v38  ;;  %2124 = vmatprep.subr.bf16.mxu1 %v4025_v39 }
  0xe1   : > { %1961 = vmatpush1.bf16.msra.mxu0 %v4020_v40  ;;  %2125 = vmatpush1.bf16.msra.mxu1 %v4023_v41 }
  0xe2   : > { %1962 = vmatprep.subr.bf16.mxu0 %v4028_v42  ;;  %2126 = vmatprep.subr.bf16.mxu1 %v4031_v43 }
  0xe5   : > { %1963 = vmatpush1.bf16.msra.mxu0 %v4026_v45  ;;  %2127 = vmatpush1.bf16.msra.mxu1 %v4029_v46 }
  0xe6   : > { %1964 = vmatprep.subr.bf16.mxu0 %v4034_v47  ;;  %2128 = vmatprep.subr.bf16.mxu1 %v4037_v48 }
  0xe9   : > { %1965 = vmatpush1.bf16.msra.mxu0 %v4032_v49  ;;  %2129 = vmatpush1.bf16.msra.mxu1 %v4035_v51  ;;  %v4105_v49 = vld [vmem:[%s5096_s3 + $0x4] ss:$16 sps:$4 sm:$0xff] (!%p3541_p6)   ;;  %v4107_v51 = vld [vmem:[%s5096_s3 + $0xc] ss:$16 sps:$4 sm:$0xff] (!%p3541_p6)  }
  0xea   : > { %1966 = vmatprep.subr.bf16.mxu0 %v4040_v52  ;;  %2130 = vmatprep.subr.bf16.mxu1 %v4043_v53  ;;  %v4109_v52 = vld [vmem:[%s5096_s3] ss:$16 sps:$4 sm:$0xff] (!%p3541_p6)   ;;  %v4110_v53 = vld [vmem:[%s5096_s3 + $0x8] ss:$16 sps:$4 sm:$0xff] (!%p3541_p6)  }
  0xed   : > { %1967 = vmatpush1.bf16.msra.mxu0 %v4038_v54  ;;  %2131 = vmatpush1.bf16.msra.mxu1 %v4041_v55  ;;  %v4111_v54 = vld [vmem:[%s5096_s3 + $0x24] ss:$16 sps:$4 sm:$0xff] (!%p3541_p6)   ;;  %v4113_v55 = vld [vmem:[%s5096_s3 + $0x2c] ss:$16 sps:$4 sm:$0xff] (!%p3541_p6)  }
  0xee   : > { %1968 = vmatprep.subr.bf16.mxu0 %v4046_v56  ;;  %2132 = vmatprep.subr.bf16.mxu1 %v4049_v57  ;;  %v4115_v56 = vld [vmem:[%s5096_s3 + $0x20] ss:$16 sps:$4 sm:$0xff] (!%p3541_p6)   ;;  %v4116_v57 = vld [vmem:[%s5096_s3 + $0x28] ss:$16 sps:$4 sm:$0xff] (!%p3541_p6)  }
  0xf1   : > { %1969 = vmatpush1.bf16.msra.mxu0 %v4044_v58  ;;  %2133 = vmatpush1.bf16.msra.mxu1 %v4047_v59  ;;  %v4117_v58 = vld [vmem:[%s5096_s3 + $0x44] ss:$16 sps:$4 sm:$0xff] (!%p3541_p6)   ;;  %v4119_v59 = vld [vmem:[%s5096_s3 + $0x4c] ss:$16 sps:$4 sm:$0xff] (!%p3541_p6)  }
  0xf2   : > { %1970 = vmatprep.subr.bf16.mxu0 %v4052_v60  ;;  %2134 = vmatprep.subr.bf16.mxu1 %v4055_v61  ;;  %v4121_v60 = vld [vmem:[%s5096_s3 + $0x40] ss:$16 sps:$4 sm:$0xff] (!%p3541_p6)   ;;  %v4122_v61 = vld [vmem:[%s5096_s3 + $0x48] ss:$16 sps:$4 sm:$0xff] (!%p3541_p6)  }
  0xf5   : > { %1971 = vmatpush1.bf16.msra.mxu0 %v4050_v62  ;;  %2135 = vmatpush1.bf16.msra.mxu1 %v4053_v63  ;;  %v4123_v62 = vld [vmem:[%s5096_s3 + $0x64] ss:$16 sps:$4 sm:$0xff] (!%p3541_p6)   ;;  %v4125_v63 = vld [vmem:[%s5096_s3 + $0x6c] ss:$16 sps:$4 sm:$0xff] (!%p3541_p6)  }
  0xf6   : > { %1972 = vmatprep.subr.bf16.mxu0 %v4058_v0  ;;  %2136 = vmatprep.subr.bf16.mxu1 %v4061_v1  ;;  %v4127_v0 = vld [vmem:[%s5096_s3 + $0x60] ss:$16 sps:$4 sm:$0xff] (!%p3541_p6)   ;;  %v4128_v1 = vld [vmem:[%s5096_s3 + $0x68] ss:$16 sps:$4 sm:$0xff] (!%p3541_p6)  }
  0xf9   : > { %1973 = vmatpush1.bf16.msra.mxu0 %v4056_v2  ;;  %2137 = vmatpush1.bf16.msra.mxu1 %v4059_v3  ;;  %v4129_v2 = vld [vmem:[%s5096_s3 + $0x84] ss:$16 sps:$4 sm:$0xff] (!%p3541_p6)   ;;  %v4131_v3 = vld [vmem:[%s5096_s3 + $0x8c] ss:$16 sps:$4 sm:$0xff] (!%p3541_p6)  }
  0xfa   : > { %1974 = vmatprep.subr.bf16.mxu0 %v4064_v4  ;;  %2138 = vmatprep.subr.bf16.mxu1 %v4067_v5  ;;  %v4133_v4 = vld [vmem:[%s5096_s3 + $0x80] ss:$16 sps:$4 sm:$0xff] (!%p3541_p6)   ;;  %v4134_v5 = vld [vmem:[%s5096_s3 + $0x88] ss:$16 sps:$4 sm:$0xff] (!%p3541_p6)  }
  0xfd   : > { %1975 = vmatpush1.bf16.msra.mxu0 %v4062_v6  ;;  %2139 = vmatpush1.bf16.msra.mxu1 %v4065_v7  ;;  %v4135_v6 = vld [vmem:[%s5096_s3 + $0xa4] ss:$16 sps:$4 sm:$0xff] (!%p3541_p6)   ;;  %v4137_v7 = vld [vmem:[%s5096_s3 + $0xac] ss:$16 sps:$4 sm:$0xff] (!%p3541_p6)  }
  0xfe   : > { %1976 = vmatprep.subr.bf16.mxu0 %v4070_v8  ;;  %2140 = vmatprep.subr.bf16.mxu1 %v4073_v9  ;;  %v4139_v8 = vld [vmem:[%s5096_s3 + $0xa0] ss:$16 sps:$4 sm:$0xff] (!%p3541_p6)   ;;  %v4140_v9 = vld [vmem:[%s5096_s3 + $0xa8] ss:$16 sps:$4 sm:$0xff] (!%p3541_p6)  }
 0x101   : > { %1977 = vmatpush1.bf16.msra.mxu0 %v4068_v11  ;;  %2141 = vmatpush1.bf16.msra.mxu1 %v4071_v12  ;;  %v4141_v11 = vld [vmem:[%s5096_s3 + $0xc4] ss:$16 sps:$4 sm:$0xff] (!%p3541_p6)   ;;  %v4143_v12 = vld [vmem:[%s5096_s3 + $0xcc] ss:$16 sps:$4 sm:$0xff] (!%p3541_p6)  }
 0x102   : > { %1978 = vmatprep.subr.bf16.mxu0 %v4076_v13  ;;  %2142 = vmatprep.subr.bf16.mxu1 %v4079_v14  ;;  %v4145_v13 = vld [vmem:[%s5096_s3 + $0xc0] ss:$16 sps:$4 sm:$0xff] (!%p3541_p6)   ;;  %v4146_v14 = vld [vmem:[%s5096_s3 + $0xc8] ss:$16 sps:$4 sm:$0xff] (!%p3541_p6)  }
 0x105   : > { %1979 = vmatpush1.bf16.msra.mxu0 %v4074_v15  ;;  %2143 = vmatpush1.bf16.msra.mxu1 %v4077_v16  ;;  %v4147_v15 = vld [vmem:[%s5096_s3 + $0xe4] ss:$16 sps:$4 sm:$0xff] (!%p3541_p6)   ;;  %v4149_v16 = vld [vmem:[%s5096_s3 + $0xec] ss:$16 sps:$4 sm:$0xff] (!%p3541_p6)  }
 0x106   : > { %1980 = vmatprep.subr.bf16.mxu0 %v4082_v17  ;;  %2144 = vmatprep.subr.bf16.mxu1 %v4085_v18  ;;  %v4151_v17 = vld [vmem:[%s5096_s3 + $0xe0] ss:$16 sps:$4 sm:$0xff] (!%p3541_p6)   ;;  %v4152_v18 = vld [vmem:[%s5096_s3 + $0xe8] ss:$16 sps:$4 sm:$0xff] (!%p3541_p6)  }
 0x109   : > { %1981 = vmatpush1.bf16.msra.mxu0 %v4080_v19  ;;  %2145 = vmatpush1.bf16.msra.mxu1 %v4083_v20  ;;  %v4153_v19 = vld [vmem:[%s5096_s3 + $0x104] ss:$16 sps:$4 sm:$0xff] (!%p3541_p6)   ;;  %v4155_v20 = vld [vmem:[%s5096_s3 + $0x10c] ss:$16 sps:$4 sm:$0xff] (!%p3541_p6)  }
 0x10a   : > { %1982 = vmatprep.subr.bf16.mxu0 %v4088_v21  ;;  %2146 = vmatprep.subr.bf16.mxu1 %v4091_v22  ;;  %v4157_v21 = vld [vmem:[%s5096_s3 + $0x100] ss:$16 sps:$4 sm:$0xff] (!%p3541_p6)   ;;  %v4158_v22 = vld [vmem:[%s5096_s3 + $0x108] ss:$16 sps:$4 sm:$0xff] (!%p3541_p6)  }
 0x10d   : > { %1983 = vmatpush1.bf16.msra.mxu0 %v4086_v23  ;;  %2147 = vmatpush1.bf16.msra.mxu1 %v4089_v25  ;;  %v4159_v23 = vld [vmem:[%s5096_s3 + $0x124] ss:$16 sps:$4 sm:$0xff] (!%p3541_p6)   ;;  %v4161_v25 = vld [vmem:[%s5096_s3 + $0x12c] ss:$16 sps:$4 sm:$0xff] (!%p3541_p6)  }
 0x10e   : > { %1984 = vmatprep.subr.bf16.mxu0 %v4094_v24  ;;  %2148 = vmatprep.subr.bf16.mxu1 %v4097_v10  ;;  %v4163_v24 = vld [vmem:[%s5096_s3 + $0x120] ss:$16 sps:$4 sm:$0xff] (!%p3541_p6)   ;;  %v4164_v10 = vld [vmem:[%s5096_s3 + $0x128] ss:$16 sps:$4 sm:$0xff] (!%p3541_p6)  }
 0x111   : > { %1985 = vmatpush1.bf16.msra.mxu0 %v4092_v28  ;;  %2149 = vmatpush1.bf16.msra.mxu1 %v4095_v29  ;;  %v4165_v28 = vld [vmem:[%s5096_s3 + $0x144] ss:$16 sps:$4 sm:$0xff] (!%p3541_p6)   ;;  %v4167_v29 = vld [vmem:[%s5096_s3 + $0x14c] ss:$16 sps:$4 sm:$0xff] (!%p3541_p6)  }
 0x112   : > { %1986 = vmatprep.subr.bf16.mxu0 %v4100_v30  ;;  %2150 = vmatprep.subr.bf16.mxu1 %v4103_v31  ;;  %v4169_v30 = vld [vmem:[%s5096_s3 + $0x140] ss:$16 sps:$4 sm:$0xff] (!%p3541_p6)   ;;  %v4170_v31 = vld [vmem:[%s5096_s3 + $0x148] ss:$16 sps:$4 sm:$0xff] (!%p3541_p6)  }
 0x115   : > { %1987 = vmatpush1.bf16.msra.mxu0 %v4098_v32  ;;  %2151 = vmatpush1.bf16.msra.mxu1 %v4101_v33  ;;  %v2194_v32 = vsub.s32 (!%p3541_p6), 0, %v4402_v44  ;;  %v4171_v33 = vld [vmem:[%s5096_s3 + $0x164] ss:$16 sps:$4 sm:$0xff] (!%p3541_p6)  }
 0x116   : > { %3044 = vmatprep.subr.bf16.mxu0 (!%p3541_p6), %v4105_v49  ;;  %3126 = vmatprep.subr.bf16.mxu1 (!%p3541_p6), %v4107_v51  ;;  %v4182_v49 = vld [vmem:[%s5096_s3 + $0x188] ss:$16 sps:$4 sm:$0xff] (!%p3541_p6)  }
 0x118   : > { %1989 = vmatmul.mubr.bf16.vlgmr.msra.gmra.mrb[0].mxu0 %v295_v34  ;;  %2153 = vmatmul.mubr.bf16.vlgmr.msra.gmra.mrb[0].mxu1 %v295_v34  ;;  %v2198_v34 = vsub.s32 (!%p3541_p6), 1, %v4402_v44 }
 0x119   : > { %3045 = vmatpush1.bf16.msra.mxu0 (!%p3541_p6), %v4109_v52  ;;  %3127 = vmatpush1.bf16.msra.mxu1 (!%p3541_p6), %v4110_v53  ;;  %v4183_v52 = vld [vmem:[%s5096_s3 + $0x1a4] ss:$16 sps:$4 sm:$0xff] (!%p3541_p6)   ;;  %v4185_v53 = vld [vmem:[%s5096_s3 + $0x1ac] ss:$16 sps:$4 sm:$0xff] (!%p3541_p6)  }
 0x11a   : > { %3046 = vmatprep.subr.bf16.mxu0 (!%p3541_p6), %v4111_v54  ;;  %3128 = vmatprep.subr.bf16.mxu1 (!%p3541_p6), %v4113_v55 }
 0x11d   : > { %3047 = vmatpush1.bf16.msra.mxu0 (!%p3541_p6), %v4115_v56  ;;  %3129 = vmatpush1.bf16.msra.mxu1 (!%p3541_p6), %v4116_v57  ;;  %v4187_v57 = vld [vmem:[%s5096_s3 + $0x1a0] ss:$16 sps:$4 sm:$0xff] (!%p3541_p6)  }
 0x11e   : > { %3048 = vmatprep.subr.bf16.mxu0 (!%p3541_p6), %v4117_v58  ;;  %3130 = vmatprep.subr.bf16.mxu1 (!%p3541_p6), %v4119_v59  ;;  %v4188_v58 = vld [vmem:[%s5096_s3 + $0x1a8] ss:$16 sps:$4 sm:$0xff] (!%p3541_p6)   ;;  %v4189_v59 = vld [vmem:[%s5096_s3 + $0x1c4] ss:$16 sps:$4 sm:$0xff] (!%p3541_p6)  }
 0x121   : > { %3049 = vmatpush1.bf16.msra.mxu0 (!%p3541_p6), %v4121_v60  ;;  %3131 = vmatpush1.bf16.msra.mxu1 (!%p3541_p6), %v4122_v61  ;;  %v4191_v60 = vld [vmem:[%s5096_s3 + $0x1cc] ss:$16 sps:$4 sm:$0xff] (!%p3541_p6)  }
 0x122   : > { %3050 = vmatprep.subr.bf16.mxu0 (!%p3541_p6), %v4123_v62  ;;  %3132 = vmatprep.subr.bf16.mxu1 (!%p3541_p6), %v4125_v63  ;;  %v4193_v63 = vld [vmem:[%s5096_s3 + $0x1c0] ss:$16 sps:$4 sm:$0xff] (!%p3541_p6)  }
 0x125   : > { %3051 = vmatpush1.bf16.msra.mxu0 (!%p3541_p6), %v4127_v0  ;;  %3133 = vmatpush1.bf16.msra.mxu1 (!%p3541_p6), %v4128_v1  ;;  %v4194_v0 = vld [vmem:[%s5096_s3 + $0x1c8] ss:$16 sps:$4 sm:$0xff] (!%p3541_p6)   ;;  %v4195_v1 = vld [vmem:[%s5096_s3 + $0x1e4] ss:$16 sps:$4 sm:$0xff] (!%p3541_p6)  }
 0x126   : > { %3052 = vmatprep.subr.bf16.mxu0 (!%p3541_p6), %v4129_v2  ;;  %3134 = vmatprep.subr.bf16.mxu1 (!%p3541_p6), %v4131_v3  ;;  %v4197_v2 = vld [vmem:[%s5096_s3 + $0x1ec] ss:$16 sps:$4 sm:$0xff] (!%p3541_p6)  }
 0x129   : > { %3053 = vmatpush1.bf16.msra.mxu0 (!%p3541_p6), %v4133_v4  ;;  %3135 = vmatpush1.bf16.msra.mxu1 (!%p3541_p6), %v4134_v5 }
 0x12a   : > { %3054 = vmatprep.subr.bf16.mxu0 (!%p3541_p6), %v4135_v6  ;;  %3136 = vmatprep.subr.bf16.mxu1 (!%p3541_p6), %v4137_v7  ;;  %v4199_v7 = vld [vmem:[%s5096_s3 + $0x1e0] ss:$16 sps:$4 sm:$0xff] (!%p3541_p6)  }
 0x12d   : > { %3055 = vmatpush1.bf16.msra.mxu0 (!%p3541_p6), %v4139_v8  ;;  %3137 = vmatpush1.bf16.msra.mxu1 (!%p3541_p6), %v4140_v9  ;;  %v4200_v8 = vld [vmem:[%s5096_s3 + $0x1e8] ss:$16 sps:$4 sm:$0xff] (!%p3541_p6)  }
 0x12e   : > { %3056 = vmatprep.subr.bf16.mxu0 (!%p3541_p6), %v4141_v11  ;;  %3138 = vmatprep.subr.bf16.mxu1 (!%p3541_p6), %v4143_v12  ;;  %v4203_v11 = vld [vmem:[%s5096_s3 + $0x204] ss:$16 sps:$4 sm:$0xff] (!%p3541_p6)   ;;  %v4206_v12 = vld [vmem:[%s5096_s3 + $0x20c] ss:$16 sps:$4 sm:$0xff] (!%p3541_p6)  }
 0x131   : > { %3057 = vmatpush1.bf16.msra.mxu0 (!%p3541_p6), %v4145_v13  ;;  %3139 = vmatpush1.bf16.msra.mxu1 (!%p3541_p6), %v4146_v14 }
 0x132   : > { %3058 = vmatprep.subr.bf16.mxu0 (!%p3541_p6), %v4147_v15  ;;  %3140 = vmatprep.subr.bf16.mxu1 (!%p3541_p6), %v4149_v16  ;;  %v4201_v15 = vld [vmem:[%s5096_s3 + $0x200] ss:$16 sps:$4 sm:$0xff] (!%p3541_p6)   ;;  %v4204_v16 = vld [vmem:[%s5096_s3 + $0x208] ss:$16 sps:$4 sm:$0xff] (!%p3541_p6)  }
 0x135   : > { %3059 = vmatpush1.bf16.msra.mxu0 (!%p3541_p6), %v4151_v17  ;;  %3141 = vmatpush1.bf16.msra.mxu1 (!%p3541_p6), %v4152_v18  ;;  %v4209_v17 = vld [vmem:[%s5096_s3 + $0x224] ss:$16 sps:$4 sm:$0xff] (!%p3541_p6)   ;;  %v4212_v18 = vld [vmem:[%s5096_s3 + $0x22c] ss:$16 sps:$4 sm:$0xff] (!%p3541_p6)  }
 0x136   : > { %3060 = vmatprep.subr.bf16.mxu0 (!%p3541_p6), %v4153_v19  ;;  %3142 = vmatprep.subr.bf16.mxu1 (!%p3541_p6), %v4155_v20  ;;  %v4207_v20 = vld [vmem:[%s5096_s3 + $0x220] ss:$16 sps:$4 sm:$0xff] (!%p3541_p6)  }
 0x139   : > { %3061 = vmatpush1.bf16.msra.mxu0 (!%p3541_p6), %v4157_v21  ;;  %3143 = vmatpush1.bf16.msra.mxu1 (!%p3541_p6), %v4158_v22  ;;  %v4210_v21 = vld [vmem:[%s5096_s3 + $0x228] ss:$16 sps:$4 sm:$0xff] (!%p3541_p6)   ;;  %v4215_v22 = vld [vmem:[%s5096_s3 + $0x244] ss:$16 sps:$4 sm:$0xff] (!%p3541_p6)  }
 0x13a   : > { %3062 = vmatprep.subr.bf16.mxu0 (!%p3541_p6), %v4159_v23  ;;  %3144 = vmatprep.subr.bf16.mxu1 (!%p3541_p6), %v4161_v25  ;;  %v4218_v23 = vld [vmem:[%s5096_s3 + $0x24c] ss:$16 sps:$4 sm:$0xff] (!%p3541_p6)   ;;  %v4213_v25 = vld [vmem:[%s5096_s3 + $0x240] ss:$16 sps:$4 sm:$0xff] (!%p3541_p6)  }
 0x13d   : > { %3063 = vmatpush1.bf16.msra.mxu0 (!%p3541_p6), %v4163_v24  ;;  %3145 = vmatpush1.bf16.msra.mxu1 (!%p3541_p6), %v4164_v10  ;;  %v4216_v24 = vld [vmem:[%s5096_s3 + $0x248] ss:$16 sps:$4 sm:$0xff] (!%p3541_p6)   ;;  %v4221_v10 = vld [vmem:[%s5096_s3 + $0x264] ss:$16 sps:$4 sm:$0xff] (!%p3541_p6)  }
 0x13e   : > { %3064 = vmatprep.subr.bf16.mxu0 (!%p3541_p6), %v4165_v28  ;;  %3146 = vmatprep.subr.bf16.mxu1 (!%p3541_p6), %v4167_v29  ;;  %v4224_v28 = vld [vmem:[%s5096_s3 + $0x26c] ss:$16 sps:$4 sm:$0xff] (!%p3541_p6)   ;;  %v4219_v29 = vld [vmem:[%s5096_s3 + $0x260] ss:$16 sps:$4 sm:$0xff] (!%p3541_p6)  }
 0x141   : > { %3065 = vmatpush1.bf16.msra.mxu0 (!%p3541_p6), %v4169_v30  ;;  %3147 = vmatpush1.bf16.msra.mxu1 (!%p3541_p6), %v4170_v31  ;;  %v4222_v30 = vld [vmem:[%s5096_s3 + $0x268] ss:$16 sps:$4 sm:$0xff] (!%p3541_p6)   ;;  %v4227_v31 = vld [vmem:[%s5096_s3 + $0x284] ss:$16 sps:$4 sm:$0xff] (!%p3541_p6)  }
 0x142   : > { %3066 = vmatprep.subr.bf16.mxu0 (!%p3541_p6), %v4171_v33  ;;  %v4230_v33 = vld [vmem:[%s5096_s3 + $0x28c] ss:$16 sps:$4 sm:$0xff] (!%p3541_p6)  }
 0x1eb   : > { %v1990_v35 = vpop.f32.mrb[0].mxu0  ;;  %v2154_v36 = vpop.f32.mrb[0].mxu1 }
 0x1ec   : > { %v1992_v27 = vpop.f32.mrb[1].mxu0  ;;  %v2156_v37 = vpop.f32.mrb[1].mxu1 }
 0x1ed   : > { %v2165_v38 = vcombine.low %v1990_v35, %v1992_v27  ;;  %v2166_v39 = vcombine.low %v2154_v36, %v2156_v37  ;;  %v1994_v40 = vpop.f32.mrb[2].mxu0  ;;  %v2158_v41 = vpop.f32.mrb[2].mxu1  ;;  %v2202_v35 = vsub.s32 (!%p3541_p6), 2, %v4402_v44  ;;  %v4173_v36 = vld [vmem:[%s5096_s3 + $0x16c] ss:$16 sps:$4 sm:$0xff] (!%p3541_p6)   ;;  %v2206_v27 = vsub.s32 (!%p3541_p6), 3, %v4402_v44 }
 0x1ee   : > { %v1995_v42 = vpop.f32.mrb[3].mxu0  ;;  %v2159_v43 = vpop.f32.mrb[3].mxu1  ;;  %v2190_v37 = vld [vmem:[%s5095_s2] sm:$0xf] (!%p3541_p6)  ;;  %3148 = vmatprep.subr.bf16.mxu1 (!%p3541_p6), %v4173_v36 }
 0x1ef   : > { %v2173_v45 = vrot.slane %v2165_v38, %v4410_v50  ;;  %v2180_v46 = vrot.slane %v2166_v39, %v4410_v50  ;;  %2188 = sbr.rel (%p3541_p6) target bundleno = 808 (0x328), region = 48  ;;  %v4175_v38 = vld [vmem:[%s5096_s3 + $0x160] ss:$16 sps:$4 sm:$0xff] (!%p3541_p6)   ;;  %v4176_v39 = vld [vmem:[%s5096_s3 + $0x168] ss:$16 sps:$4 sm:$0xff] (!%p3541_p6)   ;;  %v2195_v40 = vrot.slane (!%p3541_p6), %v2190_v37, %v2194_v32  ;;  %v2199_v41 = vrot.slane (!%p3541_p6), %v2190_v37, %v2198_v34 }
 0x1f0   : > { %v2203_v42 = vrot.slane (!%p3541_p6), %v2190_v37, %v2202_v35  ;;  %v4177_v43 = vld [vmem:[%s5096_s3 + $0x184] ss:$16 sps:$4 sm:$0xff] (!%p3541_p6)   ;;  %3067 = vmatpush1.bf16.msra.mxu0 (!%p3541_p6), %v4175_v38  ;;  %3149 = vmatpush1.bf16.msra.mxu1 (!%p3541_p6), %v4176_v39  ;;  %v4225_v36 = vld [vmem:[%s5096_s3 + $0x280] ss:$16 sps:$4 sm:$0xff] (!%p3541_p6)   ;;  %v4236_v39 = vld [vmem:[%s5096_s3 + $0x2ac] ss:$16 sps:$4 sm:$0xff] (!%p3541_p6)  }
 0x1f1   : > { %v2181_v47 = vcombine.low %v2173_v45, %v2180_v46  ;;  %v4179_v45 = vld [vmem:[%s5096_s3 + $0x18c] ss:$16 sps:$4 sm:$0xff] (!%p3541_p6)   ;;  %v2207_v46 = vrot.slane (!%p3541_p6), %v2190_v37, %v2206_v27  ;;  %3068 = vmatprep.subr.bf16.mxu0 (!%p3541_p6), %v4177_v43  ;;  %v4228_v37 = vld [vmem:[%s5096_s3 + $0x288] ss:$16 sps:$4 sm:$0xff] (!%p3541_p6)   ;;  %v4233_v38 = vld [vmem:[%s5096_s3 + $0x2a4] ss:$16 sps:$4 sm:$0xff] (!%p3541_p6)  }
 0x1f2   : > { %3150 = vmatprep.subr.bf16.mxu1 (!%p3541_p6), %v4179_v45  ;;  %v4242_v43 = vld [vmem:[%s5096_s3 + $0x2cc] ss:$16 sps:$4 sm:$0xff] (!%p3541_p6)   ;;  %v4237_v45 = vld [vmem:[%s5096_s3 + $0x2c0] ss:$16 sps:$4 sm:$0xff] (!%p3541_p6)  }
 0x1f3   : > { %v2183_v48 = vadd.f32 %v2181_v47, %v242_v26  ;;  %v2208_v26 = vcombine.low (!%p3541_p6), %v2195_v40, %v2199_v41  ;;  %v2209_v47 = vcombine.low (!%p3541_p6), %v2203_v42, %v2207_v46  ;;  %v4231_v40 = vld [vmem:[%s5096_s3 + $0x2a0] ss:$16 sps:$4 sm:$0xff] (!%p3541_p6)   ;;  %v4234_v41 = vld [vmem:[%s5096_s3 + $0x2a8] ss:$16 sps:$4 sm:$0xff] (!%p3541_p6)   ;;  %v4239_v42 = vld [vmem:[%s5096_s3 + $0x2c4] ss:$16 sps:$4 sm:$0xff] (!%p3541_p6)  }
 0x1f4   : > { %3151 = vmatpush1.bf16.msra.mxu1 (!%p3541_p6), %v4182_v49  ;;  %v4240_v46 = vld [vmem:[%s5096_s3 + $0x2c8] ss:$16 sps:$4 sm:$0xff] (!%p3541_p6)  }
 0x1f5   : > { %2184 = vst [vmem:[%s5098_s5] sm:$0xff] %v2183_v48  ;;  %v4181_v48 = vld [vmem:[%s5096_s3 + $0x180] ss:$16 sps:$4 sm:$0xff] (!%p3541_p6)   ;;  %v2216_v51 = vrot.slane (!%p3541_p6), %v2208_v26, %v4410_v50  ;;  %v2223_v54 = vrot.slane (!%p3541_p6), %v2209_v47, %v4410_v50  ;;  %3152 = vmatprep.subr.bf16.mxu1 (!%p3541_p6), %v4185_v53  ;;  %v4245_v26 = vld [vmem:[%s5096_s3 + $0x2e4] ss:$16 sps:$4 sm:$0xff] (!%p3541_p6)   ;;  %v4248_v47 = vld [vmem:[%s5096_s3 + $0x2ec] ss:$16 sps:$4 sm:$0xff] (!%p3541_p6)  }
 0x1f6   : > { %3069 = vmatpush1.bf16.msra.mxu0 %v4181_v48  ;;  %v4243_v48 = vld [vmem:[%s5096_s3 + $0x2e0] ss:$16 sps:$4 sm:$0xff]   ;;  %v4246_v49 = vld [vmem:[%s5096_s3 + $0x2e8] ss:$16 sps:$4 sm:$0xff]  }
 0x1f7   : > { %v2224_v56 = vcombine.low %v2216_v51, %v2223_v54  ;;  %3070 = vmatprep.subr.bf16.mxu0 %v4183_v52  ;;  %v4251_v51 = vld [vmem:[%s5096_s3 + $0x304] ss:$16 sps:$4 sm:$0xff]   ;;  %v4254_v52 = vld [vmem:[%s5096_s3 + $0x30c] ss:$16 sps:$4 sm:$0xff]   ;;  %v4249_v53 = vld [vmem:[%s5096_s3 + $0x300] ss:$16 sps:$4 sm:$0xff]  }
 0x1f8   : > { %3153 = vmatpush1.bf16.msra.mxu1 %v4188_v58  ;;  %v4252_v54 = vld [vmem:[%s5096_s3 + $0x308] ss:$16 sps:$4 sm:$0xff]  }
 0x1f9   : > { %3154 = vmatprep.subr.bf16.mxu1 %v4191_v60  ;;  %v4258_v58 = vld [vmem:[%s5096_s3 + $0x328] ss:$16 sps:$4 sm:$0xff]   ;;  %v4266_v60 = vld [vmem:[%s5096_s3 + $0x34c] ss:$16 sps:$4 sm:$0xff]  }
 0x1fa   : > { %3071 = vmatpush1.bf16.msra.mxu0 %v4187_v57  ;;  %v4255_v57 = vld [vmem:[%s5096_s3 + $0x320] ss:$16 sps:$4 sm:$0xff]  }
 0x1fb   : > { %3072 = vmatprep.subr.bf16.mxu0 %v4189_v59  ;;  %v4263_v59 = vld [vmem:[%s5096_s3 + $0x344] ss:$16 sps:$4 sm:$0xff]  }
 0x1fc   : > { %v2189_v55 = vld [vmem:[%s5098_s5] sm:$0xff]  ;;  %3155 = vmatpush1.bf16.msra.mxu1 %v4194_v0  ;;  %v4272_v0 = vld [vmem:[%s5096_s3 + $0x36c] ss:$16 sps:$4 sm:$0xff]  }
 0x1fd   : > { %v2226_v61 = vadd.f32 %v2224_v56, %v2189_v55  ;;  %3156 = vmatprep.subr.bf16.mxu1 %v4197_v2  ;;  %v4257_v55 = vld [vmem:[%s5096_s3 + $0x324] ss:$16 sps:$4 sm:$0xff]   ;;  %v4260_v56 = vld [vmem:[%s5096_s3 + $0x32c] ss:$16 sps:$4 sm:$0xff]   ;;  %v4270_v2 = vld [vmem:[%s5096_s3 + $0x368] ss:$16 sps:$4 sm:$0xff]  }
 0x1fe   : > { %3073 = vmatpush1.bf16.msra.mxu0 %v4193_v63  ;;  %v4269_v63 = vld [vmem:[%s5096_s3 + $0x364] ss:$16 sps:$4 sm:$0xff]  }
 0x1ff   : > { %v2227_v62 = vmax.f32 %v2226_v61, 0.0  ;;  %3074 = vmatprep.subr.bf16.mxu0 %v4195_v1  ;;  %v4261_v61 = vld [vmem:[%s5096_s3 + $0x340] ss:$16 sps:$4 sm:$0xff]  }
 0x200   : > { %3157 = vmatpush1.bf16.msra.mxu1 %v4200_v8  ;;  %v4267_v1 = vld [vmem:[%s5096_s3 + $0x360] ss:$16 sps:$4 sm:$0xff]   ;;  %v4281_v8 = vld [vmem:[%s5096_s3 + $0x3a4] ss:$16 sps:$4 sm:$0xff]  }
 0x201   : > { %v2236_v3 = vrot.slane %v2227_v62, %v4410_v50  ;;  %v2229_v4 = vcombine.high %v2227_v62, %v2227_v62  ;;  %3167 = vmatprep.subr.bf16.mxu1 %v4206_v12  ;;  %v4264_v62 = vld [vmem:[%s5096_s3 + $0x348] ss:$16 sps:$4 sm:$0xff]  }
 0x202   : > { %3075 = vmatpush1.bf16.msra.mxu0 %v4199_v7  ;;  %v4276_v7 = vld [vmem:[%s5096_s3 + $0x388] ss:$16 sps:$4 sm:$0xff]  }
 0x203   : > { %v2244_v5 = vcombine.high %v2236_v3, %v2236_v3  ;;  %v4870_v6 = vrot.slane %v2229_v4, %v4410_v50  ;;  %v2250_v14 = vpack.c.bf16 %v2236_v3, %v2236_v3  ;;  %3085 = vmatprep.subr.bf16.mxu0 %v4203_v11  ;;  %v4275_v3 = vld [vmem:[%s5096_s3 + $0x384] ss:$16 sps:$4 sm:$0xff]   ;;  %v4278_v4 = vld [vmem:[%s5096_s3 + $0x38c] ss:$16 sps:$4 sm:$0xff]   ;;  %v4279_v11 = vld [vmem:[%s5096_s3 + $0x3a0] ss:$16 sps:$4 sm:$0xff]  }
 0x204   : > { %v4282_v12 = vld [vmem:[%s5096_s3 + $0x3a8] ss:$16 sps:$4 sm:$0xff]  }
 0x205   : > { %v2251_v9 = vpack.c.bf16 %v2244_v5, %v2244_v5  ;;  %v2245_v13 = vcombine.high %v4870_v6, %v4870_v6  ;;  %v4273_v5 = vld [vmem:[%s5096_s3 + $0x380] ss:$16 sps:$4 sm:$0xff]  }
 0x207   : > { %3076 = vmatprep.mubr.bf16.mxu0 %v2251_v9  ;;  %3158 = vmatprep.mubr.bf16.mxu1 %v2251_v9  ;;  %v2253_v19 = vpack.c.bf16 %v2245_v13, %v2245_v13  ;;  %v4284_v9 = vld [vmem:[%s5096_s3 + $0x3ac] ss:$16 sps:$4 sm:$0xff]   ;;  %v4287_v13 = vld [vmem:[%s5096_s3 + $0x3c4] ss:$16 sps:$4 sm:$0xff]  }
 0x208   : > { %3077 = vmatmul.mubr.bf16.vlgmr.msra.gmra.mrb[0].mxu0 %v2250_v14  ;;  %3159 = vmatmul.mubr.bf16.vlgmr.msra.gmra.mrb[0].mxu1 %v2250_v14  ;;  %v4290_v14 = vld [vmem:[%s5096_s3 + $0x3cc] ss:$16 sps:$4 sm:$0xff]  }
 0x209   : > { %3086 = vmatpush1.bf16.msra.mxu0 %v4201_v15  ;;  %3168 = vmatpush1.bf16.msra.mxu1 %v4204_v16  ;;  %v4285_v15 = vld [vmem:[%s5096_s3 + $0x3c0] ss:$16 sps:$4 sm:$0xff]   ;;  %v4288_v16 = vld [vmem:[%s5096_s3 + $0x3c8] ss:$16 sps:$4 sm:$0xff]  }
 0x20a   : > { %3087 = vmatprep.subr.bf16.mxu0 %v4209_v17  ;;  %3169 = vmatprep.subr.bf16.mxu1 %v4212_v18  ;;  %v4293_v17 = vld [vmem:[%s5096_s3 + $0x3e4] ss:$16 sps:$4 sm:$0xff]   ;;  %v4296_v18 = vld [vmem:[%s5096_s3 + $0x3ec] ss:$16 sps:$4 sm:$0xff]  }
 0x20b   : > { %3117 = vmatprep.mubr.bf16.mxu0 %v2253_v19  ;;  %3199 = vmatprep.mubr.bf16.mxu1 %v2253_v19  ;;  %v4291_v19 = vld [vmem:[%s5096_s3 + $0x3e0] ss:$16 sps:$4 sm:$0xff]  }
 0x20d   : > { %3088 = vmatpush1.bf16.msra.mxu0 %v4207_v20  ;;  %3170 = vmatpush1.bf16.msra.mxu1 %v4210_v21  ;;  %v4294_v20 = vld [vmem:[%s5096_s3 + $0x3e8] ss:$16 sps:$4 sm:$0xff]   ;;  %v2252_v21 = vpack.c.bf16 %v4870_v6, %v4870_v6 }
 0x20e   : > { %3089 = vmatprep.subr.bf16.mxu0 %v4215_v22  ;;  %3171 = vmatprep.subr.bf16.mxu1 %v4218_v23  ;;  %v2382_v22 = vld [vmem:[%s5097_s4] sm:$0xf] }
 0x20f   : > { %v2387_v23 = vrot.slane %v2382_v22, %v2194_v32  ;;  %v2399_v6 = vrot.slane %v2382_v22, %v2206_v27 }
 0x211   : > { %3090 = vmatpush1.bf16.msra.mxu0 %v4213_v25  ;;  %3172 = vmatpush1.bf16.msra.mxu1 %v4216_v24  ;;  %v2395_v25 = vrot.slane %v2382_v22, %v2202_v35  ;;  %v2391_v24 = vrot.slane %v2382_v22, %v2198_v34 }
 0x212   : > { %3091 = vmatprep.subr.bf16.mxu0 %v4221_v10  ;;  %3173 = vmatprep.subr.bf16.mxu1 %v4224_v28 }
 0x215   : > { %3092 = vmatpush1.bf16.msra.mxu0 %v4219_v29  ;;  %3174 = vmatpush1.bf16.msra.mxu1 %v4222_v30 }
 0x216   : > { %3093 = vmatprep.subr.bf16.mxu0 %v4227_v31  ;;  %3175 = vmatprep.subr.bf16.mxu1 %v4230_v33 }
 0x219   : > { %3094 = vmatpush1.bf16.msra.mxu0 %v4225_v36  ;;  %3176 = vmatpush1.bf16.msra.mxu1 %v4228_v37 }
 0x21a   : > { %3095 = vmatprep.subr.bf16.mxu0 %v4233_v38  ;;  %3177 = vmatprep.subr.bf16.mxu1 %v4236_v39 }
 0x21d   : > { %3096 = vmatpush1.bf16.msra.mxu0 %v4231_v40  ;;  %3178 = vmatpush1.bf16.msra.mxu1 %v4234_v41 }
 0x21e   : > { %3097 = vmatprep.subr.bf16.mxu0 %v4239_v42  ;;  %3179 = vmatprep.subr.bf16.mxu1 %v4242_v43 }
 0x221   : > { %3098 = vmatpush1.bf16.msra.mxu0 %v4237_v45  ;;  %3180 = vmatpush1.bf16.msra.mxu1 %v4240_v46 }
 0x222   : > { %3099 = vmatprep.subr.bf16.mxu0 %v4245_v26  ;;  %3181 = vmatprep.subr.bf16.mxu1 %v4248_v47 }
 0x225   : > { %3100 = vmatpush1.bf16.msra.mxu0 %v4243_v48  ;;  %3182 = vmatpush1.bf16.msra.mxu1 %v4246_v49 }
 0x226   : > { %3101 = vmatprep.subr.bf16.mxu0 %v4251_v51  ;;  %3183 = vmatprep.subr.bf16.mxu1 %v4254_v52 }
 0x229   : > { %3102 = vmatpush1.bf16.msra.mxu0 %v4249_v53  ;;  %3184 = vmatpush1.bf16.msra.mxu1 %v4252_v54 }
 0x22a   : > { %3103 = vmatprep.subr.bf16.mxu0 %v4257_v55  ;;  %3185 = vmatprep.subr.bf16.mxu1 %v4260_v56 }
 0x22d   : > { %3104 = vmatpush1.bf16.msra.mxu0 %v4255_v57  ;;  %3186 = vmatpush1.bf16.msra.mxu1 %v4258_v58 }
 0x22e   : > { %3105 = vmatprep.subr.bf16.mxu0 %v4263_v59  ;;  %3187 = vmatprep.subr.bf16.mxu1 %v4266_v60 }
 0x231   : > { %3106 = vmatpush1.bf16.msra.mxu0 %v4261_v61  ;;  %3188 = vmatpush1.bf16.msra.mxu1 %v4264_v62 }
 0x232   : > { %3107 = vmatprep.subr.bf16.mxu0 %v4269_v63  ;;  %3189 = vmatprep.subr.bf16.mxu1 %v4272_v0 }
 0x235   : > { %3108 = vmatpush1.bf16.msra.mxu0 %v4267_v1  ;;  %3190 = vmatpush1.bf16.msra.mxu1 %v4270_v2 }
 0x236   : > { %3109 = vmatprep.subr.bf16.mxu0 %v4275_v3  ;;  %3191 = vmatprep.subr.bf16.mxu1 %v4278_v4 }
 0x239   : > { %3110 = vmatpush1.bf16.msra.mxu0 %v4273_v5  ;;  %3192 = vmatpush1.bf16.msra.mxu1 %v4276_v7 }
 0x23a   : > { %3111 = vmatprep.subr.bf16.mxu0 %v4281_v8  ;;  %3193 = vmatprep.subr.bf16.mxu1 %v4284_v9 }
 0x23d   : > { %3112 = vmatpush1.bf16.msra.mxu0 %v4279_v11  ;;  %3194 = vmatpush1.bf16.msra.mxu1 %v4282_v12 }
 0x23e   : > { %3113 = vmatprep.subr.bf16.mxu0 %v4287_v13  ;;  %3195 = vmatprep.subr.bf16.mxu1 %v4290_v14 }
 0x241   : > { %3114 = vmatpush1.bf16.msra.mxu0 %v4285_v15  ;;  %3196 = vmatpush1.bf16.msra.mxu1 %v4288_v16 }
 0x242   : > { %3115 = vmatprep.subr.bf16.mxu0 %v4293_v17  ;;  %3197 = vmatprep.subr.bf16.mxu1 %v4296_v18 }
 0x245   : > { %3116 = vmatpush1.bf16.msra.mxu0 %v4291_v19  ;;  %3198 = vmatpush1.bf16.msra.mxu1 %v4294_v20 }
 0x248   : > { %3118 = vmatmul.mubr.bf16.vlgmr.msra.gmra.mrb[0].mxu0 %v2252_v21  ;;  %3200 = vmatmul.mubr.bf16.vlgmr.msra.gmra.mrb[0].mxu1 %v2252_v21 }
 0x31b   : > { %v3119_v10 = vpop.f32.mrb[0].mxu0  ;;  %v3201_v28 = vpop.f32.mrb[0].mxu1 }
 0x31c   : > { %v3697_v29 = vadd.f32 %v3119_v10, %v2387_v23  ;;  %v3699_v30 = vadd.f32 %v3201_v28, %v2395_v25  ;;  %v3121_v31 = vpop.f32.mrb[1].mxu0  ;;  %v3203_v33 = vpop.f32.mrb[1].mxu1 }
 0x31d   : > { %v3698_v36 = vadd.f32 %v3121_v31, %v2391_v24  ;;  %v3700_v37 = vadd.f32 %v3203_v33, %v2399_v6  ;;  %v3123_v38 = vpop.f32.mrb[2].mxu0  ;;  %v3205_v39 = vpop.f32.mrb[2].mxu1 }
 0x31e   : > { %v3208_v32 = vmax.f32 %v3697_v29, 0.0  ;;  %v3210_v40 = vmax.f32 %v3699_v30, 0.0  ;;  %v3124_v41 = vpop.f32.mrb[3].mxu0  ;;  %v3206_v35 = vpop.f32.mrb[3].mxu1 }
 0x31f   : > { %v3209_v42 = vmax.f32 %v3698_v36, 0.0  ;;  %v3211_v43 = vmax.f32 %v3700_v37, 0.0 }
 0x321   : > { %v3216_v34 = vcombine.low %v3208_v32, %v3209_v42  ;;  %v3217_v45 = vcombine.low %v3210_v40, %v3211_v43 }
 0x323   : > { %v3224_v44 = vrot.slane %v3216_v34, %v4410_v50  ;;  %v3231_v27 = vrot.slane %v3217_v45, %v4410_v50 }
 0x325   : > { %v3232_v46 = vcombine.low %v3224_v44, %v3231_v27 }
 0x327   : > { %3234 = vst [vmem:[%s5098_s5] sm:$0xff] %v3232_v46 }
 0x328 PF: > { %s15_s18 = sadd.s32 1, %s4303_s18  }
 0x329   : > { %p12_p7 = scmp.ge.s32.totalorder %s15_s18, 10  }
 0x32b   :  { %14 = sbr.rel (!%p12_p7) target bundleno = 1 (0x1), region = 77 }

</bundles_post_ra>
